<compile_context>
chip_gen: v6e
topology: v6e:2x2x1
jax: 0.10.0
libtpu: 0.0.40
codegen_flags: <defaults>
</compile_context>

<pallas_src>
import functools

import jax
import jax.numpy as jnp
from jax.experimental import pallas as pl
from jax.experimental.pallas import tpu as pltpu


# ----------------------------------------------------------------------------
# Fused kernel: all TemporalBlocks + attention + linear head for one batch
# tile; activations never leave VMEM between layers.
# ----------------------------------------------------------------------------
def _fused_tcn_kernel(k, L, M, block_cfg, compute_dtype, *refs):
    refs = list(refs)
    out_ref = refs.pop()          # (M, out_pad)   lane-dense padded logits
    x_ref = refs.pop(0)           # (M, Cin0)      batch folded into rows

    # Row index -> time index within each batch element.
    t_idx = jax.lax.broadcasted_iota(jnp.int32, (M, 1), 0)
    if M == L:
        t_mod = t_idx
    elif L & (L - 1) == 0:        # power-of-two seq len: AND instead of rem
        t_mod = t_idx & (L - 1)
    else:
        t_mod = t_idx % L

    # Hoisted causal masks: one per distinct shift, shared by conv1/conv2 of a
    # block and across blocks with the same dilation (JAX does not CSE these).
    masks = {}
    for dilation, _ in block_cfg:
        for i in range(k):
            s = (k - 1 - i) * dilation
            if 0 < s < L and s not in masks:
                masks[s] = t_mod >= s

    def causal_dilated_conv(a_f32, a_c, w_ref, b_ref, dilation):
        # Per-tap MXU matmuls (no (M, k*Cin) concat -> no cross-lane repack).
        # Tap i = activation shifted down in time by (k-1-i)*dilation with a
        # zeroed causal prefix per batch element (== Conv1d(padding)+Chomp1d).
        y = None
        for i in range(k):
            s = (k - 1 - i) * dilation
            if s == 0:
                tap = a_c
            elif s >= L:
                continue                                      # fully in the zero pad
            else:
                rolled = pltpu.roll(a_f32, shift=s, axis=0)   # XLU sublane rotate
                tap = jnp.where(masks[s], rolled, 0.0).astype(compute_dtype)
            contrib = jnp.dot(tap, w_ref[i], preferred_element_type=jnp.float32)
            y = contrib if y is None else y + contrib
        return jnp.maximum(y + b_ref[...], 0.0)               # folded BN bias + ReLU

    z = x_ref[...].astype(jnp.float32)
    i = 0
    for dilation, has_down in block_cfg:
        w1, b1, w2, b2 = refs[i:i + 4]
        i += 4
        z_c = z.astype(compute_dtype)    # cast once; reused by conv1 tap0 + downsample
        y1 = causal_dilated_conv(z, z_c, w1, b1, dilation)
        y2 = causal_dilated_conv(y1, y1.astype(compute_dtype), w2, b2, dilation)
        if has_down:                     # 1x1-conv residual
            wd, bd = refs[i:i + 2]
            i += 2
            res = jnp.dot(z_c, wd[...], preferred_element_type=jnp.float32) + bd[...]
        else:                            # identity residual
            res = z
        z = jnp.maximum(y2 + res, 0.0)

    aw_ref, ab_ref, lw_ref, lb_ref = refs[i:i + 4]
    # attention (output width 1): VPU multiply + lane reduction, sigmoid on the EUP
    attn = jax.nn.sigmoid(
        jnp.sum(z * aw_ref[...], axis=-1, keepdims=True) + ab_ref[...])
    zw = (z * attn).astype(compute_dtype)
    # head matmul into a lane-dense (128-wide, zero-padded) output slab
    out_ref[...] = (jnp.dot(zw, lw_ref[...], preferred_element_type=jnp.float32)
                    + lb_ref[...]).astype(out_ref.dtype)


# ----------------------------------------------------------------------------
# Wrapper: single pallas_call, grid over batch tiles ("parallel" for megacore).
# ----------------------------------------------------------------------------
def tcn_forward(x, prepared, *, kernel_size, batch_tile=None):
    B, L, cin0 = x.shape
    k = kernel_size
    cdt = prepared['compute_dtype']

    if batch_tile is None:
        batch_tile = B                      # fold the whole batch into one step
    assert B % batch_tile == 0
    n_tiles = B // batch_tile
    M = batch_tile * L
    if n_tiles > 1:
        assert M % 8 == 0, "per-step row count must be sublane aligned when tiling batch"

    operands = []
    block_cfg = []
    for bp in prepared['blocks']:
        operands += [bp['w1s'], bp['b1'], bp['w2s'], bp['b2']]
        has_down = 'wd' in bp
        if has_down:
            operands += [bp['wd'], bp['bd']]
        block_cfg.append((bp['dilation'], has_down))
    hp = prepared['head']
    operands += [hp['aw'], hp['ab'], hp['lw'], hp['lb']]
    out_pad = hp['lw'].shape[-1]            # lane-dense (multiple of 128)
    output_size = prepared['output_size']

    # Flatten batch into rows in the wrapper (free, row-major reshape) and cast
    # the input once so the HBM->VMEM DMA moves compute_dtype bytes.
    x2d = x.reshape(B * L, cin0).astype(cdt)

    # -- cost estimate (advisory) ---------------------------------------------
    flops = 0
    c_last = cin0
    for bp, (_, has_down) in zip(prepared['blocks'], block_cfg):
        kk, cin, cout = bp['w1s'].shape
        flops += 2 * B * L * kk * cin * cout          # conv1
        flops += 2 * B * L * kk * cout * cout         # conv2
        if has_down:
            flops += 2 * B * L * cin * cout           # 1x1 downsample
        c_last = cout
    flops += 2 * B * L * c_last                       # attention reduce
    flops += 2 * B * L * c_last * out_pad             # head matmul
    weight_bytes = sum(int(a.size) * a.dtype.itemsize for a in operands)
    bytes_accessed = (int(x2d.size) * x2d.dtype.itemsize + weight_bytes
                      + B * L * out_pad * 4)
    cost = pl.CostEstimate(flops=flops, transcendentals=B * L,
                           bytes_accessed=bytes_accessed)

    # -- explicit VMEM budget (v5e default 16 MiB / v7x 32 MiB scoped) --------
    c_max = max([cin0, out_pad] + [bp['w1s'].shape[-1] for bp in prepared['blocks']])
    act_bytes = M * c_max * 4                         # one live f32 activation slab
    io_bytes = 2 * (M * cin0 * x2d.dtype.itemsize + M * out_pad * 4)
    est = 8 * act_bytes + 2 * weight_bytes + io_bytes
    vmem_limit = int(min(64 * 1024 * 1024, max(32 * 1024 * 1024, 2 * est)))

    kern = functools.partial(_fused_tcn_kernel, k, L, M, tuple(block_cfg), cdt)

    def _const_index_map(nd):
        return lambda b: (0,) * nd

    def _make_specs(weight_mode):
        specs = [pl.BlockSpec((M, cin0), lambda b: (b, 0))]
        for a in operands:
            if weight_mode is None:
                specs.append(pl.BlockSpec(a.shape, _const_index_map(a.ndim)))
            else:
                specs.append(pl.BlockSpec(a.shape, _const_index_map(a.ndim),
                                          pipeline_mode=weight_mode))
        return specs

    def _run(weight_mode):
        return pl.pallas_call(
            kern,
            grid=(n_tiles,),
            out_shape=jax.ShapeDtypeStruct((B * L, out_pad), jnp.float32),
            in_specs=_make_specs(weight_mode),
            out_specs=pl.BlockSpec((M, out_pad), lambda b: (b, 0)),
            compiler_params=pltpu.CompilerParams(
                dimension_semantics=("parallel",),
                vmem_limit_bytes=vmem_limit),
            cost_estimate=cost,
        )(x2d, *operands)

    try:
        # Weights never change block index -> single-buffer them (double
        # buffering constants is pure VMEM waste at real channel counts).
        out2d = _run(pl.Buffered(1))
    except Exception:
        # TODO(synk): jax builds without single-buffer support; use the default.
        out2d = _run(None)

    return out2d[:, :output_size].reshape(B, L, output_size)


# ----------------------------------------------------------------------------
# Weight prep (one-time glue): fold eval-mode BN scale into conv weights, keep
# the k taps separate (per-tap matmuls), transpose the attention row, zero-pad
# the head to a lane-dense 128-wide output, cast matmul operands.
# ----------------------------------------------------------------------------
def prepare_params(params, *, kernel_size, compute_dtype=jnp.bfloat16, lane_pad=128):
    prepared = {'blocks': [], 'compute_dtype': compute_dtype}
    for lvl, bp in enumerate(params['blocks']):
        w1s = (bp['w1'] * bp['s1'][None]).astype(compute_dtype)   # (k, Cin, Cout)
        w2s = (bp['w2'] * bp['s2'][None]).astype(compute_dtype)   # (k, Cout, Cout)
        blk = {'w1s': w1s, 'b1': bp['b1'], 'w2s': w2s, 'b2': bp['b2'],
               'dilation': 2 ** lvl}
        if 'wd' in bp:
            blk['wd'] = bp['wd'].astype(compute_dtype)
            blk['bd'] = bp['bd']
        prepared['blocks'].append(blk)

    hp = params['head']
    out = hp['lw'].shape[-1]
    out_pad = ((out + lane_pad - 1) // lane_pad) * lane_pad
    prepared['output_size'] = out
    prepared['head'] = {
        'aw': hp['aw'].T,                                           # (1, C) f32
        'ab': hp['ab'],                                             # (1, 1) f32
        'lw': jnp.pad(hp['lw'], ((0, 0), (0, out_pad - out))).astype(compute_dtype),
        'lb': jnp.pad(hp['lb'], ((0, 0), (0, out_pad - out))),      # (1, out_pad) f32
    }
    return prepared


# ----------------------------------------------------------------------------
# Pure-JAX reference (same math, no Pallas) for verification
# ----------------------------------------------------------------------------
def _ref_block(x, p, k, dilation):
    pad = (k - 1) * dilation
    L = x.shape[1]
    xp = jnp.pad(x, ((0, 0), (pad, 0), (0, 0)))
    y1 = sum(jnp.einsum('blc,co->blo', xp[:, i * dilation:i * dilation + L, :], p['w1'][i])
             for i in range(k))
    y1 = jnp.maximum(y1 * p['s1'] + p['b1'], 0.0)
    y1p = jnp.pad(y1, ((0, 0), (pad, 0), (0, 0)))
    y2 = sum(jnp.einsum('blc,co->blo', y1p[:, i * dilation:i * dilation + L, :], p['w2'][i])
             for i in range(k))
    y2 = jnp.maximum(y2 * p['s2'] + p['b2'], 0.0)
    if 'wd' in p:
        res = jnp.einsum('blc,co->blo', x, p['wd']) + p['bd']
    else:
        res = x
    return jnp.maximum(y2 + res, 0.0)


def tcn_forward_ref(x, params, *, kernel_size):
    z = x
    for i, bp in enumerate(params['blocks']):
        z = _ref_block(z, bp, kernel_size, 2 ** i)
    hp = params['head']
    attn = jax.nn.sigmoid(jnp.einsum('blc,co->blo', z, hp['aw']) + hp['ab'])
    return jnp.einsum('blc,co->blo', z * attn, hp['lw']) + hp['lb']


# ----------------------------------------------------------------------------
# Deterministic parameter init (shapes follow the PyTorch module's __init__)
# ----------------------------------------------------------------------------
def init_params(key, input_size, num_channels, output_size, kernel_size):
    eps = 1e-5
    params = {'blocks': []}
    cin = input_size
    for cout in num_channels:
        keys = jax.random.split(key, 12)
        key = keys[-1]
        # effective (weight-normalized) conv weights, stored as (k, Cin, Cout)
        w1 = jax.random.normal(keys[0], (kernel_size, cin, cout), jnp.float32) \
            * (2.0 / (cin * kernel_size)) ** 0.5
        cb1 = 0.1 * jax.random.normal(keys[1], (cout,), jnp.float32)
        g1 = 1.0 + 0.1 * jax.random.normal(keys[2], (cout,), jnp.float32)
        be1 = 0.1 * jax.random.normal(keys[3], (cout,), jnp.float32)
        w2 = jax.random.normal(keys[4], (kernel_size, cout, cout), jnp.float32) \
            * (2.0 / (cout * kernel_size)) ** 0.5
        cb2 = 0.1 * jax.random.normal(keys[5], (cout,), jnp.float32)
        g2 = 1.0 + 0.1 * jax.random.normal(keys[6], (cout,), jnp.float32)
        be2 = 0.1 * jax.random.normal(keys[7], (cout,), jnp.float32)

        # fold conv bias + eval-mode BatchNorm (running_mean=0, running_var=1)
        s1 = g1 / jnp.sqrt(1.0 + eps)
        b1 = cb1 * s1 + be1
        s2 = g2 / jnp.sqrt(1.0 + eps)
        b2 = cb2 * s2 + be2

        blk = {
            'w1': w1, 's1': s1.reshape(1, cout), 'b1': b1.reshape(1, cout),
            'w2': w2, 's2': s2.reshape(1, cout), 'b2': b2.reshape(1, cout),
        }
        if cin != cout:  # 1x1-conv downsample; identity residual otherwise
            blk['wd'] = jax.random.normal(keys[8], (cin, cout), jnp.float32) * (2.0 / cin) ** 0.5
            blk['bd'] = (0.1 * jax.random.normal(keys[9], (cout,), jnp.float32)).reshape(1, cout)
        params['blocks'].append(blk)
        cin = cout

    kh = jax.random.split(key, 4)
    C = num_channels[-1]
    params['head'] = {
        'aw': jax.random.normal(kh[0], (C, 1), jnp.float32) / jnp.sqrt(C),
        'ab': 0.1 * jax.random.normal(kh[1], (1, 1), jnp.float32),
        'lw': jax.random.normal(kh[2], (C, output_size), jnp.float32) / jnp.sqrt(C),
        'lb': 0.1 * jax.random.normal(kh[3], (1, output_size), jnp.float32),
    }
    return params


if __name__ == "__main__":
    INPUT_SIZE = 4
    OUTPUT_SIZE = 4
    NUM_CHANNELS = [8, 8]
    KERNEL_SIZE = 2
    B, L = 2, 16

    key = jax.random.PRNGKey(0)
    kx, kp = jax.random.split(key)
    x = jax.random.normal(kx, (B, L, INPUT_SIZE), jnp.float32)  # (batch, seq, features)
    params = init_params(kp, INPUT_SIZE, NUM_CHANNELS, OUTPUT_SIZE, KERNEL_SIZE)

    ref = tcn_forward_ref(x, params, kernel_size=KERNEL_SIZE)

    # f32 operands (exact path): full batch fold (grid=1) and per-batch grid (grid=B)
    prep_f32 = prepare_params(params, kernel_size=KERNEL_SIZE, compute_dtype=jnp.float32)
    logits = jax.block_until_ready(tcn_forward(x, prep_f32, kernel_size=KERNEL_SIZE))
    assert logits.shape == (B, L, OUTPUT_SIZE)
    assert jnp.allclose(logits, ref, atol=1e-4, rtol=1e-4), \
        "Pallas f32 (batch-folded) output mismatch vs JAX reference"

    logits_t1 = jax.block_until_ready(
        tcn_forward(x, prep_f32, kernel_size=KERNEL_SIZE, batch_tile=1))
    assert jnp.allclose(logits_t1, ref, atol=1e-4, rtol=1e-4), \
        "Pallas f32 (batch_tile=1) output mismatch vs JAX reference"

    # bf16 MXU operands, f32 accumulation / elementwise (fast path on v5e/v6e/v7x)
    prep_bf16 = prepare_params(params, kernel_size=KERNEL_SIZE, compute_dtype=jnp.bfloat16)
    logits_bf16 = jax.block_until_ready(tcn_forward(x, prep_bf16, kernel_size=KERNEL_SIZE))
    assert logits_bf16.shape == (B, L, OUTPUT_SIZE)
    assert jnp.allclose(logits_bf16, ref, atol=1e-1, rtol=1e-1), \
        "Pallas bf16 output mismatch vs JAX reference"

    print("KERNEL_OK")
</pallas_src>

<mosaic_0001>
module attributes {stable_mosaic.version = 11 : i64} {
  func.func @_fused_tcn_kernel(%arg0: i32, %arg1: memref<32x4xf32, #tpu.memory_space<vmem>>, %arg2: memref<2x4x8xf32, #tpu.memory_space<vmem>>, %arg3: memref<1x8xf32, #tpu.memory_space<vmem>>, %arg4: memref<2x8x8xf32, #tpu.memory_space<vmem>>, %arg5: memref<1x8xf32, #tpu.memory_space<vmem>>, %arg6: memref<4x8xf32, #tpu.memory_space<vmem>>, %arg7: memref<1x8xf32, #tpu.memory_space<vmem>>, %arg8: memref<2x8x8xf32, #tpu.memory_space<vmem>>, %arg9: memref<1x8xf32, #tpu.memory_space<vmem>>, %arg10: memref<2x8x8xf32, #tpu.memory_space<vmem>>, %arg11: memref<1x8xf32, #tpu.memory_space<vmem>>, %arg12: memref<1x8xf32, #tpu.memory_space<vmem>>, %arg13: memref<1x1xf32, #tpu.memory_space<vmem>>, %arg14: memref<8x128xf32, #tpu.memory_space<vmem>>, %arg15: memref<1x128xf32, #tpu.memory_space<vmem>>, %arg16: memref<32x128xf32, #tpu.memory_space<vmem>>) attributes {dimension_semantics = [#tpu.dimension_semantics<parallel>], iteration_bounds = array<i64: 1>, scalar_prefetch = 0 : i64, scratch_operands = 0 : i64, tpu.core_type = #tpu.core_type<tc>, window_params = [{transform_indices = @transform_0, window_bounds = array<i64: 32, 4>}, {pipeline_mode = #tpu.pipeline_mode<synchronous>, transform_indices = @transform_1, window_bounds = array<i64: 2, 4, 8>}, {pipeline_mode = #tpu.pipeline_mode<synchronous>, transform_indices = @transform_2, window_bounds = array<i64: 1, 8>}, {pipeline_mode = #tpu.pipeline_mode<synchronous>, transform_indices = @transform_3, window_bounds = array<i64: 2, 8, 8>}, {pipeline_mode = #tpu.pipeline_mode<synchronous>, transform_indices = @transform_4, window_bounds = array<i64: 1, 8>}, {pipeline_mode = #tpu.pipeline_mode<synchronous>, transform_indices = @transform_5, window_bounds = array<i64: 4, 8>}, {pipeline_mode = #tpu.pipeline_mode<synchronous>, transform_indices = @transform_6, window_bounds = array<i64: 1, 8>}, {pipeline_mode = #tpu.pipeline_mode<synchronous>, transform_indices = @transform_7, window_bounds = array<i64: 2, 8, 8>}, {pipeline_mode = #tpu.pipeline_mode<synchronous>, transform_indices = @transform_8, window_bounds = array<i64: 1, 8>}, {pipeline_mode = #tpu.pipeline_mode<synchronous>, transform_indices = @transform_9, window_bounds = array<i64: 2, 8, 8>}, {pipeline_mode = #tpu.pipeline_mode<synchronous>, transform_indices = @transform_10, window_bounds = array<i64: 1, 8>}, {pipeline_mode = #tpu.pipeline_mode<synchronous>, transform_indices = @transform_11, window_bounds = array<i64: 1, 8>}, {pipeline_mode = #tpu.pipeline_mode<synchronous>, transform_indices = @transform_12, window_bounds = array<i64: 1, 1>}, {pipeline_mode = #tpu.pipeline_mode<synchronous>, transform_indices = @transform_13, window_bounds = array<i64: 8, 128>}, {pipeline_mode = #tpu.pipeline_mode<synchronous>, transform_indices = @transform_14, window_bounds = array<i64: 1, 128>}, {transform_indices = @transform_15, window_bounds = array<i64: 32, 128>}]} {
    %0 = tpu.iota {dimensions = array<i32: 0>} : vector<32x1xi32>
    %c15_i32 = arith.constant 15 : i32
    %1 = vector.broadcast %c15_i32 : i32 to vector<32x1xi32>
    %2 = arith.andi %0, %1 : vector<32x1xi32>
    %c1_i32 = arith.constant 1 : i32
    %3 = vector.broadcast %c1_i32 : i32 to vector<32x1xi32>
    %4 = arith.cmpi sge, %2, %3 : vector<32x1xi32>
    %c2_i32 = arith.constant 2 : i32
    %5 = vector.broadcast %c2_i32 : i32 to vector<32x1xi32>
    %6 = arith.cmpi sge, %2, %5 : vector<32x1xi32>
    %c0 = arith.constant 0 : index
    %c0_0 = arith.constant 0 : index
    %7 = vector.load %arg1[%c0, %c0_0] : memref<32x4xf32, #tpu.memory_space<vmem>>, vector<32x4xf32>
    %c1_i32_1 = arith.constant 1 : i32
    %8 = tpu.dynamic_rotate %7 by %c1_i32_1 dim 0 : vector<32x4xf32>, i32 -> vector<32x4xf32>
    %cst = arith.constant 0.000000e+00 : f32
    %9 = vector.shape_cast %4 : vector<32x1xi1> to vector<32x1xi1>
    %10 = vector.broadcast %9 : vector<32x1xi1> to vector<32x4xi1>
    %11 = vector.broadcast %cst : f32 to vector<32x4xf32>
    %12 = arith.select %10, %8, %11 : vector<32x4xi1>, vector<32x4xf32>
    %c0_2 = arith.constant 0 : index
    %c0_3 = arith.constant 0 : index
    %c0_4 = arith.constant 0 : index
    %13 = vector.load %arg2[%c0_2, %c0_3, %c0_4] : memref<2x4x8xf32, #tpu.memory_space<vmem>>, vector<1x4x8xf32>
    %14 = vector.shape_cast %13 : vector<1x4x8xf32> to vector<4x8xf32>
    %cst_5 = arith.constant dense<0.000000e+00> : vector<32x8xf32>
    %15 = tpu.matmul %12, %14, %cst_5 {dimension_numbers = #tpu.dot_dimension_numbers<[1], [0], [0], [1], [0, 0, 1, 1], [], []>} : vector<32x4xf32>, vector<4x8xf32>, vector<32x8xf32> -> vector<32x8xf32>
    %c1 = arith.constant 1 : index
    %c0_6 = arith.constant 0 : index
    %c0_7 = arith.constant 0 : index
    %16 = vector.load %arg2[%c1, %c0_6, %c0_7] : memref<2x4x8xf32, #tpu.memory_space<vmem>>, vector<1x4x8xf32>
    %17 = vector.shape_cast %16 : vector<1x4x8xf32> to vector<4x8xf32>
    %cst_8 = arith.constant dense<0.000000e+00> : vector<32x8xf32>
    %18 = tpu.matmul %7, %17, %cst_8 {dimension_numbers = #tpu.dot_dimension_numbers<[1], [0], [0], [1], [0, 0, 1, 1], [], []>} : vector<32x4xf32>, vector<4x8xf32>, vector<32x8xf32> -> vector<32x8xf32>
    %19 = arith.addf %15, %18 : vector<32x8xf32>
    %c0_9 = arith.constant 0 : index
    %c0_10 = arith.constant 0 : index
    %20 = vector.load %arg3[%c0_9, %c0_10] : memref<1x8xf32, #tpu.memory_space<vmem>>, vector<1x8xf32>
    %21 = vector.broadcast %20 : vector<1x8xf32> to vector<32x8xf32>
    %22 = arith.addf %19, %21 : vector<32x8xf32>
    %cst_11 = arith.constant 0.000000e+00 : f32
    %23 = vector.broadcast %cst_11 : f32 to vector<32x8xf32>
    %24 = arith.maximumf %22, %23 : vector<32x8xf32>
    %c1_i32_12 = arith.constant 1 : i32
    %25 = tpu.dynamic_rotate %24 by %c1_i32_12 dim 0 : vector<32x8xf32>, i32 -> vector<32x8xf32>
    %cst_13 = arith.constant 0.000000e+00 : f32
    %26 = vector.shape_cast %4 : vector<32x1xi1> to vector<32x1xi1>
    %27 = vector.broadcast %26 : vector<32x1xi1> to vector<32x8xi1>
    %28 = vector.broadcast %cst_13 : f32 to vector<32x8xf32>
    %29 = arith.select %27, %25, %28 : vector<32x8xi1>, vector<32x8xf32>
    %c0_14 = arith.constant 0 : index
    %c0_15 = arith.constant 0 : index
    %c0_16 = arith.constant 0 : index
    %30 = vector.load %arg4[%c0_14, %c0_15, %c0_16] : memref<2x8x8xf32, #tpu.memory_space<vmem>>, vector<1x8x8xf32>
    %31 = vector.shape_cast %30 : vector<1x8x8xf32> to vector<8x8xf32>
    %cst_17 = arith.constant dense<0.000000e+00> : vector<32x8xf32>
    %32 = tpu.matmul %29, %31, %cst_17 {dimension_numbers = #tpu.dot_dimension_numbers<[1], [0], [0], [1], [0, 0, 1, 1], [], []>} : vector<32x8xf32>, vector<8x8xf32>, vector<32x8xf32> -> vector<32x8xf32>
    %c1_18 = arith.constant 1 : index
    %c0_19 = arith.constant 0 : index
    %c0_20 = arith.constant 0 : index
    %33 = vector.load %arg4[%c1_18, %c0_19, %c0_20] : memref<2x8x8xf32, #tpu.memory_space<vmem>>, vector<1x8x8xf32>
    %34 = vector.shape_cast %33 : vector<1x8x8xf32> to vector<8x8xf32>
    %cst_21 = arith.constant dense<0.000000e+00> : vector<32x8xf32>
    %35 = tpu.matmul %24, %34, %cst_21 {dimension_numbers = #tpu.dot_dimension_numbers<[1], [0], [0], [1], [0, 0, 1, 1], [], []>} : vector<32x8xf32>, vector<8x8xf32>, vector<32x8xf32> -> vector<32x8xf32>
    %36 = arith.addf %32, %35 : vector<32x8xf32>
    %c0_22 = arith.constant 0 : index
    %c0_23 = arith.constant 0 : index
    %37 = vector.load %arg5[%c0_22, %c0_23] : memref<1x8xf32, #tpu.memory_space<vmem>>, vector<1x8xf32>
    %38 = vector.broadcast %37 : vector<1x8xf32> to vector<32x8xf32>
    %39 = arith.addf %36, %38 : vector<32x8xf32>
    %cst_24 = arith.constant 0.000000e+00 : f32
    %40 = vector.broadcast %cst_24 : f32 to vector<32x8xf32>
    %41 = arith.maximumf %39, %40 : vector<32x8xf32>
    %c0_25 = arith.constant 0 : index
    %c0_26 = arith.constant 0 : index
    %42 = vector.load %arg6[%c0_25, %c0_26] : memref<4x8xf32, #tpu.memory_space<vmem>>, vector<4x8xf32>
    %cst_27 = arith.constant dense<0.000000e+00> : vector<32x8xf32>
    %43 = tpu.matmul %7, %42, %cst_27 {dimension_numbers = #tpu.dot_dimension_numbers<[1], [0], [0], [1], [0, 0, 1, 1], [], []>} : vector<32x4xf32>, vector<4x8xf32>, vector<32x8xf32> -> vector<32x8xf32>
    %c0_28 = arith.constant 0 : index
    %c0_29 = arith.constant 0 : index
    %44 = vector.load %arg7[%c0_28, %c0_29] : memref<1x8xf32, #tpu.memory_space<vmem>>, vector<1x8xf32>
    %45 = vector.broadcast %44 : vector<1x8xf32> to vector<32x8xf32>
    %46 = arith.addf %43, %45 : vector<32x8xf32>
    %47 = arith.addf %41, %46 : vector<32x8xf32>
    %cst_30 = arith.constant 0.000000e+00 : f32
    %48 = vector.broadcast %cst_30 : f32 to vector<32x8xf32>
    %49 = arith.maximumf %47, %48 : vector<32x8xf32>
    %c2_i32_31 = arith.constant 2 : i32
    %50 = tpu.dynamic_rotate %49 by %c2_i32_31 dim 0 : vector<32x8xf32>, i32 -> vector<32x8xf32>
    %cst_32 = arith.constant 0.000000e+00 : f32
    %51 = vector.shape_cast %6 : vector<32x1xi1> to vector<32x1xi1>
    %52 = vector.broadcast %51 : vector<32x1xi1> to vector<32x8xi1>
    %53 = vector.broadcast %cst_32 : f32 to vector<32x8xf32>
    %54 = arith.select %52, %50, %53 : vector<32x8xi1>, vector<32x8xf32>
    %c0_33 = arith.constant 0 : index
    %c0_34 = arith.constant 0 : index
    %c0_35 = arith.constant 0 : index
    %55 = vector.load %arg8[%c0_33, %c0_34, %c0_35] : memref<2x8x8xf32, #tpu.memory_space<vmem>>, vector<1x8x8xf32>
    %56 = vector.shape_cast %55 : vector<1x8x8xf32> to vector<8x8xf32>
    %cst_36 = arith.constant dense<0.000000e+00> : vector<32x8xf32>
    %57 = tpu.matmul %54, %56, %cst_36 {dimension_numbers = #tpu.dot_dimension_numbers<[1], [0], [0], [1], [0, 0, 1, 1], [], []>} : vector<32x8xf32>, vector<8x8xf32>, vector<32x8xf32> -> vector<32x8xf32>
    %c1_37 = arith.constant 1 : index
    %c0_38 = arith.constant 0 : index
    %c0_39 = arith.constant 0 : index
    %58 = vector.load %arg8[%c1_37, %c0_38, %c0_39] : memref<2x8x8xf32, #tpu.memory_space<vmem>>, vector<1x8x8xf32>
    %59 = vector.shape_cast %58 : vector<1x8x8xf32> to vector<8x8xf32>
    %cst_40 = arith.constant dense<0.000000e+00> : vector<32x8xf32>
    %60 = tpu.matmul %49, %59, %cst_40 {dimension_numbers = #tpu.dot_dimension_numbers<[1], [0], [0], [1], [0, 0, 1, 1], [], []>} : vector<32x8xf32>, vector<8x8xf32>, vector<32x8xf32> -> vector<32x8xf32>
    %61 = arith.addf %57, %60 : vector<32x8xf32>
    %c0_41 = arith.constant 0 : index
    %c0_42 = arith.constant 0 : index
    %62 = vector.load %arg9[%c0_41, %c0_42] : memref<1x8xf32, #tpu.memory_space<vmem>>, vector<1x8xf32>
    %63 = vector.broadcast %62 : vector<1x8xf32> to vector<32x8xf32>
    %64 = arith.addf %61, %63 : vector<32x8xf32>
    %cst_43 = arith.constant 0.000000e+00 : f32
    %65 = vector.broadcast %cst_43 : f32 to vector<32x8xf32>
    %66 = arith.maximumf %64, %65 : vector<32x8xf32>
    %c2_i32_44 = arith.constant 2 : i32
    %67 = tpu.dynamic_rotate %66 by %c2_i32_44 dim 0 : vector<32x8xf32>, i32 -> vector<32x8xf32>
    %cst_45 = arith.constant 0.000000e+00 : f32
    %68 = vector.shape_cast %6 : vector<32x1xi1> to vector<32x1xi1>
    %69 = vector.broadcast %68 : vector<32x1xi1> to vector<32x8xi1>
    %70 = vector.broadcast %cst_45 : f32 to vector<32x8xf32>
    %71 = arith.select %69, %67, %70 : vector<32x8xi1>, vector<32x8xf32>
    %c0_46 = arith.constant 0 : index
    %c0_47 = arith.constant 0 : index
    %c0_48 = arith.constant 0 : index
    %72 = vector.load %arg10[%c0_46, %c0_47, %c0_48] : memref<2x8x8xf32, #tpu.memory_space<vmem>>, vector<1x8x8xf32>
    %73 = vector.shape_cast %72 : vector<1x8x8xf32> to vector<8x8xf32>
    %cst_49 = arith.constant dense<0.000000e+00> : vector<32x8xf32>
    %74 = tpu.matmul %71, %73, %cst_49 {dimension_numbers = #tpu.dot_dimension_numbers<[1], [0], [0], [1], [0, 0, 1, 1], [], []>} : vector<32x8xf32>, vector<8x8xf32>, vector<32x8xf32> -> vector<32x8xf32>
    %c1_50 = arith.constant 1 : index
    %c0_51 = arith.constant 0 : index
    %c0_52 = arith.constant 0 : index
    %75 = vector.load %arg10[%c1_50, %c0_51, %c0_52] : memref<2x8x8xf32, #tpu.memory_space<vmem>>, vector<1x8x8xf32>
    %76 = vector.shape_cast %75 : vector<1x8x8xf32> to vector<8x8xf32>
    %cst_53 = arith.constant dense<0.000000e+00> : vector<32x8xf32>
    %77 = tpu.matmul %66, %76, %cst_53 {dimension_numbers = #tpu.dot_dimension_numbers<[1], [0], [0], [1], [0, 0, 1, 1], [], []>} : vector<32x8xf32>, vector<8x8xf32>, vector<32x8xf32> -> vector<32x8xf32>
    %78 = arith.addf %74, %77 : vector<32x8xf32>
    %c0_54 = arith.constant 0 : index
    %c0_55 = arith.constant 0 : index
    %79 = vector.load %arg11[%c0_54, %c0_55] : memref<1x8xf32, #tpu.memory_space<vmem>>, vector<1x8xf32>
    %80 = vector.broadcast %79 : vector<1x8xf32> to vector<32x8xf32>
    %81 = arith.addf %78, %80 : vector<32x8xf32>
    %cst_56 = arith.constant 0.000000e+00 : f32
    %82 = vector.broadcast %cst_56 : f32 to vector<32x8xf32>
    %83 = arith.maximumf %81, %82 : vector<32x8xf32>
    %84 = arith.addf %83, %49 : vector<32x8xf32>
    %cst_57 = arith.constant 0.000000e+00 : f32
    %85 = vector.broadcast %cst_57 : f32 to vector<32x8xf32>
    %86 = arith.maximumf %84, %85 : vector<32x8xf32>
    %c0_58 = arith.constant 0 : index
    %c0_59 = arith.constant 0 : index
    %87 = vector.load %arg12[%c0_58, %c0_59] : memref<1x8xf32, #tpu.memory_space<vmem>>, vector<1x8xf32>
    %88 = vector.broadcast %87 : vector<1x8xf32> to vector<32x8xf32>
    %89 = arith.mulf %86, %88 : vector<32x8xf32>
    %cst_60 = arith.constant dense<0.000000e+00> : vector<32xf32>
    %90 = vector.multi_reduction <add>, %89, %cst_60 [1] : vector<32x8xf32> to vector<32xf32>
    %91 = vector.shape_cast %90 : vector<32xf32> to vector<32x1xf32>
    %c0_61 = arith.constant 0 : index
    %c0_62 = arith.constant 0 : index
    %92 = vector.load %arg13[%c0_61, %c0_62] : memref<1x1xf32, #tpu.memory_space<vmem>>, vector<1x1xf32>
    %93 = vector.broadcast %92 : vector<1x1xf32> to vector<32x1xf32>
    %94 = arith.addf %91, %93 : vector<32x1xf32>
    %95 = arith.negf %94 : vector<32x1xf32>
    %96 = math.exp %95 : vector<32x1xf32>
    %cst_63 = arith.constant 1.000000e+00 : f32
    %97 = vector.broadcast %cst_63 : f32 to vector<32x1xf32>
    %98 = arith.addf %97, %96 : vector<32x1xf32>
    %99 = arith.divf %97, %98 : vector<32x1xf32>
    %100 = vector.broadcast %99 : vector<32x1xf32> to vector<32x8xf32>
    %101 = arith.mulf %86, %100 : vector<32x8xf32>
    %c0_64 = arith.constant 0 : index
    %c0_65 = arith.constant 0 : index
    %102 = vector.load %arg14[%c0_64, %c0_65] : memref<8x128xf32, #tpu.memory_space<vmem>>, vector<8x128xf32>
    %cst_66 = arith.constant dense<0.000000e+00> : vector<32x128xf32>
    %103 = tpu.matmul %101, %102, %cst_66 {dimension_numbers = #tpu.dot_dimension_numbers<[1], [0], [0], [1], [0, 0, 1, 1], [], []>} : vector<32x8xf32>, vector<8x128xf32>, vector<32x128xf32> -> vector<32x128xf32>
    %c0_67 = arith.constant 0 : index
    %c0_68 = arith.constant 0 : index
    %104 = vector.load %arg15[%c0_67, %c0_68] : memref<1x128xf32, #tpu.memory_space<vmem>>, vector<1x128xf32>
    %105 = vector.broadcast %104 : vector<1x128xf32> to vector<32x128xf32>
    %106 = arith.addf %103, %105 : vector<32x128xf32>
    %c0_69 = arith.constant 0 : index
    %c0_70 = arith.constant 0 : index
    %107 = vector.load %arg16[%c0_69, %c0_70] : memref<32x128xf32, #tpu.memory_space<vmem>>, vector<32x128xf32>
    tpu.vector_store %arg16[%c0_69, %c0_70], %106 {strides = array<i32>} : memref<32x128xf32, #tpu.memory_space<vmem>>, vector<32x128xf32>,
    return
  }
  func.func @transform_0(%arg0: i32) -> (i32, i32) {
    %c0_i32 = arith.constant 0 : i32
    %c0_i32_0 = arith.constant 0 : i32
    return %arg0, %c0_i32 : i32, i32
  }
  func.func @transform_1(%arg0: i32) -> (i32, i32, i32) {
    %c0_i32 = arith.constant 0 : i32
    %c0_i32_0 = arith.constant 0 : i32
    %c0_i32_1 = arith.constant 0 : i32
    %c0_i32_2 = arith.constant 0 : i32
    return %c0_i32, %c0_i32_0, %c0_i32_1 : i32, i32, i32
  }
  func.func @transform_2(%arg0: i32) -> (i32, i32) {
    %c0_i32 = arith.constant 0 : i32
    %c0_i32_0 = arith.constant 0 : i32
    %c0_i32_1 = arith.constant 0 : i32
    return %c0_i32, %c0_i32_0 : i32, i32
  }
  func.func @transform_3(%arg0: i32) -> (i32, i32, i32) {
    %c0_i32 = arith.constant 0 : i32
    %c0_i32_0 = arith.constant 0 : i32
    %c0_i32_1 = arith.constant 0 : i32
    %c0_i32_2 = arith.constant 0 : i32
    return %c0_i32, %c0_i32_0, %c0_i32_1 : i32, i32, i32
  }
  func.func @transform_4(%arg0: i32) -> (i32, i32) {
    %c0_i32 = arith.constant 0 : i32
    %c0_i32_0 = arith.constant 0 : i32
    %c0_i32_1 = arith.constant 0 : i32
    return %c0_i32, %c0_i32_0 : i32, i32
  }
  func.func @transform_5(%arg0: i32) -> (i32, i32) {
    %c0_i32 = arith.constant 0 : i32
    %c0_i32_0 = arith.constant 0 : i32
    %c0_i32_1 = arith.constant 0 : i32
    return %c0_i32, %c0_i32_0 : i32, i32
  }
  func.func @transform_6(%arg0: i32) -> (i32, i32) {
    %c0_i32 = arith.constant 0 : i32
    %c0_i32_0 = arith.constant 0 : i32
    %c0_i32_1 = arith.constant 0 : i32
    return %c0_i32, %c0_i32_0 : i32, i32
  }
  func.func @transform_7(%arg0: i32) -> (i32, i32, i32) {
    %c0_i32 = arith.constant 0 : i32
    %c0_i32_0 = arith.constant 0 : i32
    %c0_i32_1 = arith.constant 0 : i32
    %c0_i32_2 = arith.constant 0 : i32
    return %c0_i32, %c0_i32_0, %c0_i32_1 : i32, i32, i32
  }
  func.func @transform_8(%arg0: i32) -> (i32, i32) {
    %c0_i32 = arith.constant 0 : i32
    %c0_i32_0 = arith.constant 0 : i32
    %c0_i32_1 = arith.constant 0 : i32
    return %c0_i32, %c0_i32_0 : i32, i32
  }
  func.func @transform_9(%arg0: i32) -> (i32, i32, i32) {
    %c0_i32 = arith.constant 0 : i32
    %c0_i32_0 = arith.constant 0 : i32
    %c0_i32_1 = arith.constant 0 : i32
    %c0_i32_2 = arith.constant 0 : i32
    return %c0_i32, %c0_i32_0, %c0_i32_1 : i32, i32, i32
  }
  func.func @transform_10(%arg0: i32) -> (i32, i32) {
    %c0_i32 = arith.constant 0 : i32
    %c0_i32_0 = arith.constant 0 : i32
    %c0_i32_1 = arith.constant 0 : i32
    return %c0_i32, %c0_i32_0 : i32, i32
  }
  func.func @transform_11(%arg0: i32) -> (i32, i32) {
    %c0_i32 = arith.constant 0 : i32
    %c0_i32_0 = arith.constant 0 : i32
    %c0_i32_1 = arith.constant 0 : i32
    return %c0_i32, %c0_i32_0 : i32, i32
  }
  func.func @transform_12(%arg0: i32) -> (i32, i32) {
    %c0_i32 = arith.constant 0 : i32
    %c0_i32_0 = arith.constant 0 : i32
    %c0_i32_1 = arith.constant 0 : i32
    return %c0_i32, %c0_i32_0 : i32, i32
  }
  func.func @transform_13(%arg0: i32) -> (i32, i32) {
    %c0_i32 = arith.constant 0 : i32
    %c0_i32_0 = arith.constant 0 : i32
    %c0_i32_1 = arith.constant 0 : i32
    return %c0_i32, %c0_i32_0 : i32, i32
  }
  func.func @transform_14(%arg0: i32) -> (i32, i32) {
    %c0_i32 = arith.constant 0 : i32
    %c0_i32_0 = arith.constant 0 : i32
    %c0_i32_1 = arith.constant 0 : i32
    return %c0_i32, %c0_i32_0 : i32, i32
  }
  func.func @transform_15(%arg0: i32) -> (i32, i32) {
    %c0_i32 = arith.constant 0 : i32
    %c0_i32_0 = arith.constant 0 : i32
    return %arg0, %c0_i32 : i32, i32
  }
}

module attributes {stable_mosaic.version = 11 : i64} {
  func.func @_fused_tcn_kernel(%arg0: i32, %arg1: memref<32x4xf32, #tpu.memory_space<vmem>>, %arg2: memref<2x4x8xf32, #tpu.memory_space<vmem>>, %arg3: memref<1x8xf32, #tpu.memory_space<vmem>>, %arg4: memref<2x8x8xf32, #tpu.memory_space<vmem>>, %arg5: memref<1x8xf32, #tpu.memory_space<vmem>>, %arg6: memref<4x8xf32, #tpu.memory_space<vmem>>, %arg7: memref<1x8xf32, #tpu.memory_space<vmem>>, %arg8: memref<2x8x8xf32, #tpu.memory_space<vmem>>, %arg9: memref<1x8xf32, #tpu.memory_space<vmem>>, %arg10: memref<2x8x8xf32, #tpu.memory_space<vmem>>, %arg11: memref<1x8xf32, #tpu.memory_space<vmem>>, %arg12: memref<1x8xf32, #tpu.memory_space<vmem>>, %arg13: memref<1x1xf32, #tpu.memory_space<vmem>>, %arg14: memref<8x128xf32, #tpu.memory_space<vmem>>, %arg15: memref<1x128xf32, #tpu.memory_space<vmem>>, %arg16: memref<32x128xf32, #tpu.memory_space<vmem>>) attributes {dimension_semantics = [#tpu.dimension_semantics<parallel>], iteration_bounds = array<i64: 1>, scalar_prefetch = 0 : i64, scratch_operands = 0 : i64, tpu.core_type = #tpu.core_type<tc>, window_params = [{transform_indices = @transform_0, window_bounds = array<i64: 32, 4>}, {pipeline_mode = #tpu.pipeline_mode<synchronous>, transform_indices = @transform_1, window_bounds = array<i64: 2, 4, 8>}, {pipeline_mode = #tpu.pipeline_mode<synchronous>, transform_indices = @transform_2, window_bounds = array<i64: 1, 8>}, {pipeline_mode = #tpu.pipeline_mode<synchronous>, transform_indices = @transform_3, window_bounds = array<i64: 2, 8, 8>}, {pipeline_mode = #tpu.pipeline_mode<synchronous>, transform_indices = @transform_4, window_bounds = array<i64: 1, 8>}, {pipeline_mode = #tpu.pipeline_mode<synchronous>, transform_indices = @transform_5, window_bounds = array<i64: 4, 8>}, {pipeline_mode = #tpu.pipeline_mode<synchronous>, transform_indices = @transform_6, window_bounds = array<i64: 1, 8>}, {pipeline_mode = #tpu.pipeline_mode<synchronous>, transform_indices = @transform_7, window_bounds = array<i64: 2, 8, 8>}, {pipeline_mode = #tpu.pipeline_mode<synchronous>, transform_indices = @transform_8, window_bounds = array<i64: 1, 8>}, {pipeline_mode = #tpu.pipeline_mode<synchronous>, transform_indices = @transform_9, window_bounds = array<i64: 2, 8, 8>}, {pipeline_mode = #tpu.pipeline_mode<synchronous>, transform_indices = @transform_10, window_bounds = array<i64: 1, 8>}, {pipeline_mode = #tpu.pipeline_mode<synchronous>, transform_indices = @transform_11, window_bounds = array<i64: 1, 8>}, {pipeline_mode = #tpu.pipeline_mode<synchronous>, transform_indices = @transform_12, window_bounds = array<i64: 1, 1>}, {pipeline_mode = #tpu.pipeline_mode<synchronous>, transform_indices = @transform_13, window_bounds = array<i64: 8, 128>}, {pipeline_mode = #tpu.pipeline_mode<synchronous>, transform_indices = @transform_14, window_bounds = array<i64: 1, 128>}, {transform_indices = @transform_15, window_bounds = array<i64: 32, 128>}]} {
    %0 = tpu.iota {dimensions = array<i32: 0>} : vector<32x1xi32>
    %c15_i32 = arith.constant 15 : i32
    %1 = vector.broadcast %c15_i32 : i32 to vector<32x1xi32>
    %2 = arith.andi %0, %1 : vector<32x1xi32>
    %c1_i32 = arith.constant 1 : i32
    %3 = vector.broadcast %c1_i32 : i32 to vector<32x1xi32>
    %4 = arith.cmpi sge, %2, %3 : vector<32x1xi32>
    %c2_i32 = arith.constant 2 : i32
    %5 = vector.broadcast %c2_i32 : i32 to vector<32x1xi32>
    %6 = arith.cmpi sge, %2, %5 : vector<32x1xi32>
    %c0 = arith.constant 0 : index
    %c0_0 = arith.constant 0 : index
    %7 = vector.load %arg1[%c0, %c0_0] : memref<32x4xf32, #tpu.memory_space<vmem>>, vector<32x4xf32>
    %c1_i32_1 = arith.constant 1 : i32
    %8 = tpu.dynamic_rotate %7 by %c1_i32_1 dim 0 : vector<32x4xf32>, i32 -> vector<32x4xf32>
    %cst = arith.constant 0.000000e+00 : f32
    %9 = vector.shape_cast %4 : vector<32x1xi1> to vector<32x1xi1>
    %10 = vector.broadcast %9 : vector<32x1xi1> to vector<32x4xi1>
    %11 = vector.broadcast %cst : f32 to vector<32x4xf32>
    %12 = arith.select %10, %8, %11 : vector<32x4xi1>, vector<32x4xf32>
    %c0_2 = arith.constant 0 : index
    %c0_3 = arith.constant 0 : index
    %c0_4 = arith.constant 0 : index
    %13 = vector.load %arg2[%c0_2, %c0_3, %c0_4] : memref<2x4x8xf32, #tpu.memory_space<vmem>>, vector<1x4x8xf32>
    %14 = vector.shape_cast %13 : vector<1x4x8xf32> to vector<4x8xf32>
    %cst_5 = arith.constant dense<0.000000e+00> : vector<32x8xf32>
    %15 = tpu.matmul %12, %14, %cst_5 {dimension_numbers = #tpu.dot_dimension_numbers<[1], [0], [0], [1], [0, 0, 1, 1], [], []>} : vector<32x4xf32>, vector<4x8xf32>, vector<32x8xf32> -> vector<32x8xf32>
    %c1 = arith.constant 1 : index
    %c0_6 = arith.constant 0 : index
    %c0_7 = arith.constant 0 : index
    %16 = vector.load %arg2[%c1, %c0_6, %c0_7] : memref<2x4x8xf32, #tpu.memory_space<vmem>>, vector<1x4x8xf32>
    %17 = vector.shape_cast %16 : vector<1x4x8xf32> to vector<4x8xf32>
    %cst_8 = arith.constant dense<0.000000e+00> : vector<32x8xf32>
    %18 = tpu.matmul %7, %17, %cst_8 {dimension_numbers = #tpu.dot_dimension_numbers<[1], [0], [0], [1], [0, 0, 1, 1], [], []>} : vector<32x4xf32>, vector<4x8xf32>, vector<32x8xf32> -> vector<32x8xf32>
    %19 = arith.addf %15, %18 : vector<32x8xf32>
    %c0_9 = arith.constant 0 : index
    %c0_10 = arith.constant 0 : index
    %20 = vector.load %arg3[%c0_9, %c0_10] : memref<1x8xf32, #tpu.memory_space<vmem>>, vector<1x8xf32>
    %21 = vector.broadcast %20 : vector<1x8xf32> to vector<32x8xf32>
    %22 = arith.addf %19, %21 : vector<32x8xf32>
    %cst_11 = arith.constant 0.000000e+00 : f32
    %23 = vector.broadcast %cst_11 : f32 to vector<32x8xf32>
    %24 = arith.maximumf %22, %23 : vector<32x8xf32>
    %c1_i32_12 = arith.constant 1 : i32
    %25 = tpu.dynamic_rotate %24 by %c1_i32_12 dim 0 : vector<32x8xf32>, i32 -> vector<32x8xf32>
    %cst_13 = arith.constant 0.000000e+00 : f32
    %26 = vector.shape_cast %4 : vector<32x1xi1> to vector<32x1xi1>
    %27 = vector.broadcast %26 : vector<32x1xi1> to vector<32x8xi1>
    %28 = vector.broadcast %cst_13 : f32 to vector<32x8xf32>
    %29 = arith.select %27, %25, %28 : vector<32x8xi1>, vector<32x8xf32>
    %c0_14 = arith.constant 0 : index
    %c0_15 = arith.constant 0 : index
    %c0_16 = arith.constant 0 : index
    %30 = vector.load %arg4[%c0_14, %c0_15, %c0_16] : memref<2x8x8xf32, #tpu.memory_space<vmem>>, vector<1x8x8xf32>
    %31 = vector.shape_cast %30 : vector<1x8x8xf32> to vector<8x8xf32>
    %cst_17 = arith.constant dense<0.000000e+00> : vector<32x8xf32>
    %32 = tpu.matmul %29, %31, %cst_17 {dimension_numbers = #tpu.dot_dimension_numbers<[1], [0], [0], [1], [0, 0, 1, 1], [], []>} : vector<32x8xf32>, vector<8x8xf32>, vector<32x8xf32> -> vector<32x8xf32>
    %c1_18 = arith.constant 1 : index
    %c0_19 = arith.constant 0 : index
    %c0_20 = arith.constant 0 : index
    %33 = vector.load %arg4[%c1_18, %c0_19, %c0_20] : memref<2x8x8xf32, #tpu.memory_space<vmem>>, vector<1x8x8xf32>
    %34 = vector.shape_cast %33 : vector<1x8x8xf32> to vector<8x8xf32>
    %cst_21 = arith.constant dense<0.000000e+00> : vector<32x8xf32>
    %35 = tpu.matmul %24, %34, %cst_21 {dimension_numbers = #tpu.dot_dimension_numbers<[1], [0], [0], [1], [0, 0, 1, 1], [], []>} : vector<32x8xf32>, vector<8x8xf32>, vector<32x8xf32> -> vector<32x8xf32>
    %36 = arith.addf %32, %35 : vector<32x8xf32>
    %c0_22 = arith.constant 0 : index
    %c0_23 = arith.constant 0 : index
    %37 = vector.load %arg5[%c0_22, %c0_23] : memref<1x8xf32, #tpu.memory_space<vmem>>, vector<1x8xf32>
    %38 = vector.broadcast %37 : vector<1x8xf32> to vector<32x8xf32>
    %39 = arith.addf %36, %38 : vector<32x8xf32>
    %cst_24 = arith.constant 0.000000e+00 : f32
    %40 = vector.broadcast %cst_24 : f32 to vector<32x8xf32>
    %41 = arith.maximumf %39, %40 : vector<32x8xf32>
    %c0_25 = arith.constant 0 : index
    %c0_26 = arith.constant 0 : index
    %42 = vector.load %arg6[%c0_25, %c0_26] : memref<4x8xf32, #tpu.memory_space<vmem>>, vector<4x8xf32>
    %cst_27 = arith.constant dense<0.000000e+00> : vector<32x8xf32>
    %43 = tpu.matmul %7, %42, %cst_27 {dimension_numbers = #tpu.dot_dimension_numbers<[1], [0], [0], [1], [0, 0, 1, 1], [], []>} : vector<32x4xf32>, vector<4x8xf32>, vector<32x8xf32> -> vector<32x8xf32>
    %c0_28 = arith.constant 0 : index
    %c0_29 = arith.constant 0 : index
    %44 = vector.load %arg7[%c0_28, %c0_29] : memref<1x8xf32, #tpu.memory_space<vmem>>, vector<1x8xf32>
    %45 = vector.broadcast %44 : vector<1x8xf32> to vector<32x8xf32>
    %46 = arith.addf %43, %45 : vector<32x8xf32>
    %47 = arith.addf %41, %46 : vector<32x8xf32>
    %cst_30 = arith.constant 0.000000e+00 : f32
    %48 = vector.broadcast %cst_30 : f32 to vector<32x8xf32>
    %49 = arith.maximumf %47, %48 : vector<32x8xf32>
    %c2_i32_31 = arith.constant 2 : i32
    %50 = tpu.dynamic_rotate %49 by %c2_i32_31 dim 0 : vector<32x8xf32>, i32 -> vector<32x8xf32>
    %cst_32 = arith.constant 0.000000e+00 : f32
    %51 = vector.shape_cast %6 : vector<32x1xi1> to vector<32x1xi1>
    %52 = vector.broadcast %51 : vector<32x1xi1> to vector<32x8xi1>
    %53 = vector.broadcast %cst_32 : f32 to vector<32x8xf32>
    %54 = arith.select %52, %50, %53 : vector<32x8xi1>, vector<32x8xf32>
    %c0_33 = arith.constant 0 : index
    %c0_34 = arith.constant 0 : index
    %c0_35 = arith.constant 0 : index
    %55 = vector.load %arg8[%c0_33, %c0_34, %c0_35] : memref<2x8x8xf32, #tpu.memory_space<vmem>>, vector<1x8x8xf32>
    %56 = vector.shape_cast %55 : vector<1x8x8xf32> to vector<8x8xf32>
    %cst_36 = arith.constant dense<0.000000e+00> : vector<32x8xf32>
    %57 = tpu.matmul %54, %56, %cst_36 {dimension_numbers = #tpu.dot_dimension_numbers<[1], [0], [0], [1], [0, 0, 1, 1], [], []>} : vector<32x8xf32>, vector<8x8xf32>, vector<32x8xf32> -> vector<32x8xf32>
    %c1_37 = arith.constant 1 : index
    %c0_38 = arith.constant 0 : index
    %c0_39 = arith.constant 0 : index
    %58 = vector.load %arg8[%c1_37, %c0_38, %c0_39] : memref<2x8x8xf32, #tpu.memory_space<vmem>>, vector<1x8x8xf32>
    %59 = vector.shape_cast %58 : vector<1x8x8xf32> to vector<8x8xf32>
    %cst_40 = arith.constant dense<0.000000e+00> : vector<32x8xf32>
    %60 = tpu.matmul %49, %59, %cst_40 {dimension_numbers = #tpu.dot_dimension_numbers<[1], [0], [0], [1], [0, 0, 1, 1], [], []>} : vector<32x8xf32>, vector<8x8xf32>, vector<32x8xf32> -> vector<32x8xf32>
    %61 = arith.addf %57, %60 : vector<32x8xf32>
    %c0_41 = arith.constant 0 : index
    %c0_42 = arith.constant 0 : index
    %62 = vector.load %arg9[%c0_41, %c0_42] : memref<1x8xf32, #tpu.memory_space<vmem>>, vector<1x8xf32>
    %63 = vector.broadcast %62 : vector<1x8xf32> to vector<32x8xf32>
    %64 = arith.addf %61, %63 : vector<32x8xf32>
    %cst_43 = arith.constant 0.000000e+00 : f32
    %65 = vector.broadcast %cst_43 : f32 to vector<32x8xf32>
    %66 = arith.maximumf %64, %65 : vector<32x8xf32>
    %c2_i32_44 = arith.constant 2 : i32
    %67 = tpu.dynamic_rotate %66 by %c2_i32_44 dim 0 : vector<32x8xf32>, i32 -> vector<32x8xf32>
    %cst_45 = arith.constant 0.000000e+00 : f32
    %68 = vector.shape_cast %6 : vector<32x1xi1> to vector<32x1xi1>
    %69 = vector.broadcast %68 : vector<32x1xi1> to vector<32x8xi1>
    %70 = vector.broadcast %cst_45 : f32 to vector<32x8xf32>
    %71 = arith.select %69, %67, %70 : vector<32x8xi1>, vector<32x8xf32>
    %c0_46 = arith.constant 0 : index
    %c0_47 = arith.constant 0 : index
    %c0_48 = arith.constant 0 : index
    %72 = vector.load %arg10[%c0_46, %c0_47, %c0_48] : memref<2x8x8xf32, #tpu.memory_space<vmem>>, vector<1x8x8xf32>
    %73 = vector.shape_cast %72 : vector<1x8x8xf32> to vector<8x8xf32>
    %cst_49 = arith.constant dense<0.000000e+00> : vector<32x8xf32>
    %74 = tpu.matmul %71, %73, %cst_49 {dimension_numbers = #tpu.dot_dimension_numbers<[1], [0], [0], [1], [0, 0, 1, 1], [], []>} : vector<32x8xf32>, vector<8x8xf32>, vector<32x8xf32> -> vector<32x8xf32>
    %c1_50 = arith.constant 1 : index
    %c0_51 = arith.constant 0 : index
    %c0_52 = arith.constant 0 : index
    %75 = vector.load %arg10[%c1_50, %c0_51, %c0_52] : memref<2x8x8xf32, #tpu.memory_space<vmem>>, vector<1x8x8xf32>
    %76 = vector.shape_cast %75 : vector<1x8x8xf32> to vector<8x8xf32>
    %cst_53 = arith.constant dense<0.000000e+00> : vector<32x8xf32>
    %77 = tpu.matmul %66, %76, %cst_53 {dimension_numbers = #tpu.dot_dimension_numbers<[1], [0], [0], [1], [0, 0, 1, 1], [], []>} : vector<32x8xf32>, vector<8x8xf32>, vector<32x8xf32> -> vector<32x8xf32>
    %78 = arith.addf %74, %77 : vector<32x8xf32>
    %c0_54 = arith.constant 0 : index
    %c0_55 = arith.constant 0 : index
    %79 = vector.load %arg11[%c0_54, %c0_55] : memref<1x8xf32, #tpu.memory_space<vmem>>, vector<1x8xf32>
    %80 = vector.broadcast %79 : vector<1x8xf32> to vector<32x8xf32>
    %81 = arith.addf %78, %80 : vector<32x8xf32>
    %cst_56 = arith.constant 0.000000e+00 : f32
    %82 = vector.broadcast %cst_56 : f32 to vector<32x8xf32>
    %83 = arith.maximumf %81, %82 : vector<32x8xf32>
    %84 = arith.addf %83, %49 : vector<32x8xf32>
    %cst_57 = arith.constant 0.000000e+00 : f32
    %85 = vector.broadcast %cst_57 : f32 to vector<32x8xf32>
    %86 = arith.maximumf %84, %85 : vector<32x8xf32>
    %c0_58 = arith.constant 0 : index
    %c0_59 = arith.constant 0 : index
    %87 = vector.load %arg12[%c0_58, %c0_59] : memref<1x8xf32, #tpu.memory_space<vmem>>, vector<1x8xf32>
    %88 = vector.broadcast %87 : vector<1x8xf32> to vector<32x8xf32>
    %89 = arith.mulf %86, %88 : vector<32x8xf32>
    %cst_60 = arith.constant dense<0.000000e+00> : vector<32xf32>
    %90 = vector.multi_reduction <add>, %89, %cst_60 [1] : vector<32x8xf32> to vector<32xf32>
    %91 = vector.shape_cast %90 : vector<32xf32> to vector<32x1xf32>
    %c0_61 = arith.constant 0 : index
    %c0_62 = arith.constant 0 : index
    %92 = vector.load %arg13[%c0_61, %c0_62] : memref<1x1xf32, #tpu.memory_space<vmem>>, vector<1x1xf32>
    %93 = vector.broadcast %92 : vector<1x1xf32> to vector<32x1xf32>
    %94 = arith.addf %91, %93 : vector<32x1xf32>
    %95 = arith.negf %94 : vector<32x1xf32>
    %96 = math.exp %95 : vector<32x1xf32>
    %cst_63 = arith.constant 1.000000e+00 : f32
    %97 = vector.broadcast %cst_63 : f32 to vector<32x1xf32>
    %98 = arith.addf %97, %96 : vector<32x1xf32>
    %99 = arith.divf %97, %98 : vector<32x1xf32>
    %100 = vector.broadcast %99 : vector<32x1xf32> to vector<32x8xf32>
    %101 = arith.mulf %86, %100 : vector<32x8xf32>
    %c0_64 = arith.constant 0 : index
    %c0_65 = arith.constant 0 : index
    %102 = vector.load %arg14[%c0_64, %c0_65] : memref<8x128xf32, #tpu.memory_space<vmem>>, vector<8x128xf32>
    %cst_66 = arith.constant dense<0.000000e+00> : vector<32x128xf32>
    %103 = tpu.matmul %101, %102, %cst_66 {dimension_numbers = #tpu.dot_dimension_numbers<[1], [0], [0], [1], [0, 0, 1, 1], [], []>} : vector<32x8xf32>, vector<8x128xf32>, vector<32x128xf32> -> vector<32x128xf32>
    %c0_67 = arith.constant 0 : index
    %c0_68 = arith.constant 0 : index
    %104 = vector.load %arg15[%c0_67, %c0_68] : memref<1x128xf32, #tpu.memory_space<vmem>>, vector<1x128xf32>
    %105 = vector.broadcast %104 : vector<1x128xf32> to vector<32x128xf32>
    %106 = arith.addf %103, %105 : vector<32x128xf32>
    %c0_69 = arith.constant 0 : index
    %c0_70 = arith.constant 0 : index
    %107 = vector.load %arg16[%c0_69, %c0_70] : memref<32x128xf32, #tpu.memory_space<vmem>>, vector<32x128xf32>
    tpu.vector_store %arg16[%c0_69, %c0_70], %106 {strides = array<i32>} : memref<32x128xf32, #tpu.memory_space<vmem>>, vector<32x128xf32>,
    return
  }
  func.func @transform_0(%arg0: i32) -> (i32, i32) {
    %c0_i32 = arith.constant 0 : i32
    %c0_i32_0 = arith.constant 0 : i32
    return %arg0, %c0_i32 : i32, i32
  }
  func.func @transform_1(%arg0: i32) -> (i32, i32, i32) {
    %c0_i32 = arith.constant 0 : i32
    %c0_i32_0 = arith.constant 0 : i32
    %c0_i32_1 = arith.constant 0 : i32
    %c0_i32_2 = arith.constant 0 : i32
    return %c0_i32, %c0_i32_0, %c0_i32_1 : i32, i32, i32
  }
  func.func @transform_2(%arg0: i32) -> (i32, i32) {
    %c0_i32 = arith.constant 0 : i32
    %c0_i32_0 = arith.constant 0 : i32
    %c0_i32_1 = arith.constant 0 : i32
    return %c0_i32, %c0_i32_0 : i32, i32
  }
  func.func @transform_3(%arg0: i32) -> (i32, i32, i32) {
    %c0_i32 = arith.constant 0 : i32
    %c0_i32_0 = arith.constant 0 : i32
    %c0_i32_1 = arith.constant 0 : i32
    %c0_i32_2 = arith.constant 0 : i32
    return %c0_i32, %c0_i32_0, %c0_i32_1 : i32, i32, i32
  }
  func.func @transform_4(%arg0: i32) -> (i32, i32) {
    %c0_i32 = arith.constant 0 : i32
    %c0_i32_0 = arith.constant 0 : i32
    %c0_i32_1 = arith.constant 0 : i32
    return %c0_i32, %c0_i32_0 : i32, i32
  }
  func.func @transform_5(%arg0: i32) -> (i32, i32) {
    %c0_i32 = arith.constant 0 : i32
    %c0_i32_0 = arith.constant 0 : i32
    %c0_i32_1 = arith.constant 0 : i32
    return %c0_i32, %c0_i32_0 : i32, i32
  }
  func.func @transform_6(%arg0: i32) -> (i32, i32) {
    %c0_i32 = arith.constant 0 : i32
    %c0_i32_0 = arith.constant 0 : i32
    %c0_i32_1 = arith.constant 0 : i32
    return %c0_i32, %c0_i32_0 : i32, i32
  }
  func.func @transform_7(%arg0: i32) -> (i32, i32, i32) {
    %c0_i32 = arith.constant 0 : i32
    %c0_i32_0 = arith.constant 0 : i32
    %c0_i32_1 = arith.constant 0 : i32
    %c0_i32_2 = arith.constant 0 : i32
    return %c0_i32, %c0_i32_0, %c0_i32_1 : i32, i32, i32
  }
  func.func @transform_8(%arg0: i32) -> (i32, i32) {
    %c0_i32 = arith.constant 0 : i32
    %c0_i32_0 = arith.constant 0 : i32
    %c0_i32_1 = arith.constant 0 : i32
    return %c0_i32, %c0_i32_0 : i32, i32
  }
  func.func @transform_9(%arg0: i32) -> (i32, i32, i32) {
    %c0_i32 = arith.constant 0 : i32
    %c0_i32_0 = arith.constant 0 : i32
    %c0_i32_1 = arith.constant 0 : i32
    %c0_i32_2 = arith.constant 0 : i32
    return %c0_i32, %c0_i32_0, %c0_i32_1 : i32, i32, i32
  }
  func.func @transform_10(%arg0: i32) -> (i32, i32) {
    %c0_i32 = arith.constant 0 : i32
    %c0_i32_0 = arith.constant 0 : i32
    %c0_i32_1 = arith.constant 0 : i32
    return %c0_i32, %c0_i32_0 : i32, i32
  }
  func.func @transform_11(%arg0: i32) -> (i32, i32) {
    %c0_i32 = arith.constant 0 : i32
    %c0_i32_0 = arith.constant 0 : i32
    %c0_i32_1 = arith.constant 0 : i32
    return %c0_i32, %c0_i32_0 : i32, i32
  }
  func.func @transform_12(%arg0: i32) -> (i32, i32) {
    %c0_i32 = arith.constant 0 : i32
    %c0_i32_0 = arith.constant 0 : i32
    %c0_i32_1 = arith.constant 0 : i32
    return %c0_i32, %c0_i32_0 : i32, i32
  }
  func.func @transform_13(%arg0: i32) -> (i32, i32) {
    %c0_i32 = arith.constant 0 : i32
    %c0_i32_0 = arith.constant 0 : i32
    %c0_i32_1 = arith.constant 0 : i32
    return %c0_i32, %c0_i32_0 : i32, i32
  }
  func.func @transform_14(%arg0: i32) -> (i32, i32) {
    %c0_i32 = arith.constant 0 : i32
    %c0_i32_0 = arith.constant 0 : i32
    %c0_i32_1 = arith.constant 0 : i32
    return %c0_i32, %c0_i32_0 : i32, i32
  }
  func.func @transform_15(%arg0: i32) -> (i32, i32) {
    %c0_i32 = arith.constant 0 : i32
    %c0_i32_0 = arith.constant 0 : i32
    return %arg0, %c0_i32 : i32, i32
  }
}

</mosaic_0001>

<bundles_post_ra>
// kernel: tpu_custom_call.1
= control target key start
LH: loop header
LB: loop body
LE: loop exit
PB: predicated region body
PF: predicated region fallthrough
CT: control target
= control target key end

     0   :  { %s2146_s0 = inlined_call_operand.vmem [shape: f32[32,4], index: 0, kind: input, shape index: {}]   ;;  %s2147_s1 = inlined_call_operand.hbm [shape: f32[2,4,8], index: 1, kind: input, shape index: {}]   ;;  %s2148_s2 = inlined_call_operand.hbm [shape: f32[1,8], index: 2, kind: input, shape index: {}]   ;;  %s2149_s3 = inlined_call_operand.vmem [shape: f32[2,8,8], index: 3, kind: input, shape index: {}]   ;;  %s2150_s4 = inlined_call_operand.hbm [shape: f32[1,8], index: 4, kind: input, shape index: {}]   ;;  %s2151_s5 = inlined_call_operand.hbm [shape: f32[4,8], index: 5, kind: input, shape index: {}]   ;;  %s2152_s6 = inlined_call_operand.hbm [shape: f32[1,8], index: 6, kind: input, shape index: {}]   ;;  %s2153_s7 = inlined_call_operand.vmem [shape: f32[2,8,8], index: 7, kind: input, shape index: {}]   ;;  %s2154_s8 = inlined_call_operand.hbm [shape: f32[1,8], index: 8, kind: input, shape index: {}]   ;;  %s2155_s9 = inlined_call_operand.vmem [shape: f32[2,8,8], index: 9, kind: input, shape index: {}]   ;;  %s2156_s10 = inlined_call_operand.hbm [shape: f32[1,8], index: 10, kind: input, shape index: {}]   ;;  %s2157_s11 = inlined_call_operand.vmem [shape: f32[1,8], index: 11, kind: input, shape index: {}]   ;;  %s2158_s12 = inlined_call_operand.<no memory space> [shape: f32[1,1], index: 12, kind: input, shape index: {}]   ;;  %s2159_s13 = inlined_call_operand.vmem [shape: f32[8,128], index: 13, kind: input, shape index: {}]   ;;  %s2160_s14 = inlined_call_operand.vmem [shape: f32[1,128], index: 14, kind: input, shape index: {}]   ;;  %s2161_s15 = inlined_call_operand.hbm [shape: f32[32,128], index: 15, kind: output, shape index: {}]  }
   0x1   :  { %v20_v0 = vstv %s2158_s12 }
   0x2   :  { %21 = vst [vmem:[#allocation2] sm:$0x1] %v20_v0 }
   0x3   :  { %22 = vsyncpa [#allocation4], 0 }
   0x4   :  { %23 = vsyncpa [#allocation7], 0 }
   0x5   :  { %24 = vsyncpa [#allocation10], 0 }
   0x6   :  { %25 = vsyncpa [#allocation13], 0 }
   0x7   :  { %26 = vsyncpa [#allocation5], 0  ;;  %s1792_s20 = smov [#allocation6]   ;;  %s1793_s22 = smov [#allocation9]  }
   0x8   :  { %s47_s21 = sshll.u32 %s1792_s20, 4  ;;  %s69_s23 = sshll.u32 %s1793_s22, 4  ;;  %s48_s21 = int_to_ptr.vmem [resolvable:$true] %s47_s21  ;;  %s70_s23 = int_to_ptr.vmem [resolvable:$true] %s69_s23 }
   0x9   :  { %s1630_s24 = scalar_lea.vmem %s48_s21, 16  ;;  %s1634_s25 = scalar_lea.vmem %s48_s21, 32 }
   0xa   :  { %p1631_p0 = scmp.ne.s32.totalorder %s48_s21, %s1630_s24  ;;  %p1635_p1 = scmp.lt.s32.totalorder %s48_s21, %s48_s21 }
   0xb   :  { %p1636_p2 = scmp.lt.s32.totalorder %s1634_s25, %s1630_s24 }
   0xd   :  { %p1637_p3 = por %p1636_p2, %p1635_p1 }
   0xf   :  { %p1638_p4 = pnand %p1637_p3, %p1631_p0 }
  0x11   :  { %1641 = shalt.err (!%p1638_p4)
}
  0x12   :  { %50 = dma.hbm_to_vmem [thread:$0]  %s2148_s2, 16, %s48_s21, [#allocation7]  }
  0x13   :  { %s1650_s27 = scalar_lea.vmem %s70_s23, 64  ;;  %p1655_p6 = scmp.lt.s32.totalorder %s70_s23, %s70_s23 }
  0x14   :  { %p1651_p5 = scmp.ne.s32.totalorder %s70_s23, %s1650_s27  ;;  %p1656_p7 = scmp.lt.s32.totalorder %s1650_s27, %s1650_s27 }
  0x16   :  { %p1657_p8 = por %p1656_p7, %p1655_p6 }
  0x18   :  { %p1658_p9 = pnand %p1657_p8, %p1651_p5 }
  0x1a   :  { %1661 = shalt.err (!%p1658_p9)
}
  0x1b   :  { %72 = dma.hbm_to_vmem [thread:$0]  %s2151_s5, 64, %s70_s23, [#allocation10]  }
  0x1c   :  { %s1794_s30 = smov [#allocation12]   ;;  %s1795_s17 = smov [#allocation3]  }
  0x1d   :  { %s91_s16 = sshll.u32 %s1794_s30, 4  ;;  %s34_s18 = sshll.u32 %s1795_s17, 4  ;;  %s92_s16 = int_to_ptr.vmem [resolvable:$true] %s91_s16  ;;  %s35_s18 = int_to_ptr.vmem [resolvable:$true] %s34_s18 }
  0x1e   :  { %s1670_s19 = scalar_lea.vmem %s92_s16, 16  ;;  %s1674_s2 = scalar_lea.vmem %s92_s16, 32 }
  0x1f   :  { %p1671_p10 = scmp.ne.s32.totalorder %s92_s16, %s1670_s19  ;;  %p1675_p11 = scmp.lt.s32.totalorder %s92_s16, %s92_s16 }
  0x20   :  { %p1676_p12 = scmp.lt.s32.totalorder %s1674_s2, %s1670_s19 }
  0x22   :  { %p1677_p13 = por %p1676_p12, %p1675_p11 }
  0x24   :  { %p1678_p0 = pnand %p1677_p13, %p1671_p10 }
  0x26   :  { %1681 = shalt.err (!%p1678_p0)
}
  0x27   :  { %94 = dma.hbm_to_vmem [thread:$0]  %s2154_s8, 16, %s92_s16, [#allocation13]  }
  0x28   :  { %s1690_s22 = scalar_lea.vmem %s35_s18, 128  ;;  %p1695_p2 = scmp.lt.s32.totalorder %s35_s18, %s35_s18 }
  0x29   :  { %p1691_p1 = scmp.ne.s32.totalorder %s35_s18, %s1690_s22  ;;  %p1696_p3 = scmp.lt.s32.totalorder %s1690_s22, %s1690_s22 }
  0x2b   :  { %p1697_p4 = por %p1696_p3, %p1695_p2 }
  0x2d   :  { %p1698_p5 = pnand %p1697_p4, %p1691_p1 }
  0x2f   :  { %1701 = shalt.err (!%p1698_p5)
}
  0x30   :  { %s1796_s5 = smov 64   ;;  %s1797_s23 = smov 4  }
  0x31   :  { %40 = dma.hbm_to_vmem [thread:$0]  %s2147_s1, 128, %s35_s18, [#allocation4], %s1796_s5, %s1796_s5, %s1797_s23  }
  0x32   :  { %s1798_s12 = smov [#allocation8]   ;;  %s1799_s27 = smov [#allocation11]  }
  0x33   :  { %s59_s26 = sshll.u32 %s1798_s12, 4  ;;  %s79_s28 = sshll.u32 %s1799_s27, 4  ;;  %s60_s26 = int_to_ptr.vmem [resolvable:$true] %s59_s26  ;;  %s80_s28 = int_to_ptr.vmem [resolvable:$true] %s79_s28 }
  0x34   :  { %s1710_s8 = scalar_lea.vmem %s60_s26, 16  ;;  %s1714_s29 = scalar_lea.vmem %s60_s26, 32 }
  0x35   :  { %p1711_p6 = scmp.ne.s32.totalorder %s60_s26, %s1710_s8  ;;  %p1715_p7 = scmp.lt.s32.totalorder %s60_s26, %s60_s26 }
  0x36   :  { %p1716_p8 = scmp.lt.s32.totalorder %s1714_s29, %s1710_s8 }
  0x38   :  { %p1717_p9 = por %p1716_p8, %p1715_p7 }
  0x3a   :  { %p1718_p10 = pnand %p1717_p9, %p1711_p6 }
  0x3c   :  { %1721 = shalt.err (!%p1718_p10)
}
  0x3d   :  { %62 = dma.hbm_to_vmem [thread:$0]  %s2150_s4, 16, %s60_s26, [#allocation7]  }
  0x3e   :  { %s1730_s17 = scalar_lea.vmem %s80_s28, 16  ;;  %s1734_s1 = scalar_lea.vmem %s80_s28, 32 }
  0x3f   :  { %p1731_p11 = scmp.ne.s32.totalorder %s80_s28, %s1730_s17  ;;  %p1735_p12 = scmp.lt.s32.totalorder %s80_s28, %s80_s28 }
  0x40   :  { %p1736_p13 = scmp.lt.s32.totalorder %s1734_s1, %s1730_s17 }
  0x42   :  { %p1737_p0 = por %p1736_p13, %p1735_p12 }
  0x44   :  { %p1738_p1 = pnand %p1737_p0, %p1731_p11 }
  0x46   :  { %1741 = shalt.err (!%p1738_p1)
}
  0x47   :  { %82 = dma.hbm_to_vmem [thread:$0]  %s2152_s6, 16, %s80_s28, [#allocation10]  }
  0x48   :  { %s1800_s2 = smov [#allocation14]  }
  0x49   :  { %s103_s20 = sshll.u32 %s1800_s2, 4  ;;  %s104_s20 = int_to_ptr.vmem [resolvable:$true] %s103_s20 }
  0x4a   :  { %s1750_s21 = scalar_lea.vmem %s104_s20, 16  ;;  %s1754_s22 = scalar_lea.vmem %s104_s20, 32 }
  0x4b   :  { %p1751_p2 = scmp.ne.s32.totalorder %s104_s20, %s1750_s21  ;;  %p1755_p3 = scmp.lt.s32.totalorder %s104_s20, %s104_s20 }
  0x4c   :  { %p1756_p4 = scmp.lt.s32.totalorder %s1754_s22, %s1750_s21 }
  0x4e   :  { %p1757_p5 = por %p1756_p4, %p1755_p3 }
  0x50   :  { %p1758_p6 = pnand %p1757_p5, %p1751_p2 }
  0x52   :  { %1761 = shalt.err (!%p1758_p6)
}
  0x53   :  { %106 = dma.hbm_to_vmem [thread:$0]  %s2156_s10, 16, %s104_s20, [#allocation13]  }
  0x54   :  { %1782 = dma.done.wait [#allocation4], 128  }
  0x55   :  { %1783 = vsyncadd [#allocation4], 4294967168 }
  0x56   :  { %1784 = dma.done.wait [#allocation7], 32  }
  0x57   :  { %1785 = vsyncadd [#allocation7], 4294967264 }
  0x58   :  { %1786 = dma.done.wait [#allocation10], 80  }
  0x59   :  { %1787 = vsyncadd [#allocation10], 4294967216 }
  0x5a   :  { %1788 = dma.done.wait [#allocation13], 32  }
  0x5b   :  { %1789 = vsyncadd [#allocation13], 4294967264  ;;  %v136_v1 = vlaneseq  ;;  %vm194_vm0 = vcmask 1043456   ;;  %vm181_vm1 = vcmask 31744   ;;  %v180_v6 = vld [vmem:[#allocation3 + $0x4] sm:$0xf] }
  0x5c   :  { %v1919_v7 = vld [vmem:[%s2146_s0] sm:$0xff]  ;;  %v1924_v8 = vld [vmem:[%s2146_s0 + $0x8] sm:$0xff]  ;;  %1511 = vmatprep.subr.msk.mxu0 %vm194_vm0, %v180_v6  ;;  %v1935_v12 = vld [vmem:[%s2146_s0 + $0x18] sm:$0xff]  ;;  %vm413_vm5 = vcmask 64512   ;;  %s1802_s22 = smov [#allocation15]  }
  0x5d   :  { %v1909_v2 = vshrl.u32 %v136_v1, 7  ;;  %v157_v9 = vrot.slane %v1919_v7, 7  ;;  %1513 = vmatprep.mubr.msk.f32.mxu0 %vm181_vm1, %v1919_v7  ;;  %v158_v10 = vrot.slane %v1924_v8, 7  ;;  %v178_v11 = vld [vmem:[#allocation3] sm:$0xf]  ;;  %v1940_v13 = vld [vmem:[%s2146_s0 + $0x10] sm:$0xff]  ;;  %1512 = vmatpush3.msk.msra.mxu0 %vm194_vm0, %v180_v6 }
  0x5e   :  { %1519 = vmatprep.subr.msk.mxu1 %vm194_vm0, %v178_v11  ;;  %v160_v15 = vrot.slane %v1935_v12, 7  ;;  %v159_v16 = vrot.slane %v1940_v13, 7  ;;  %1514 = vmatmul.mubr.msk.f32.vlgmr.msra.gmra.mxu0 %vm181_vm1, %v1924_v8  ;;  %v1414_v24 = vld [vmem:[%s2149_s3 + $0x8] sm:$0xff]  ;;  %v410_v25 = vld [vmem:[%s2149_s3] sm:$0xff]  ;;  %s1388_s4 = sshll.u32 %s1802_s22, 4  ;;  %s1389_s4 = int_to_ptr.vmem [resolvable:$true] %s1388_s4 }
  0x5f   :  { %v1912_v3 = vadd.s32 16, %v1909_v2  ;;  %v141_v4 = vand.u32 15, %v1909_v2  ;;  %vm161_vm2 = vcmp.lt.s32.totalorder %v1909_v2, 1  ;;  %1520 = vmatpush3.msk.msra.mxu1 %vm194_vm0, %v178_v11  ;;  %1516 = vmatprep.mubr.msk.f32.mxu0 %vm181_vm1, %v1940_v13  ;;  %v623_v26 = vld [vmem:[#allocation9] sm:$0xf]  ;;  %v748_v59 = vld [vmem:[%s2153_s7] sm:$0xff]  ;;  %p1767_p8 = scmp.lt.s32.totalorder %s1389_s4, %s1389_s4 }
  0x60   :  { %v165_v18 = vsel %vm161_vm2, %v160_v15, %v157_v9  ;;  %v164_v19 = vsel %vm161_vm2, %v157_v9, %v158_v10  ;;  %v163_v20 = vsel %vm161_vm2, %v158_v10, %v159_v16  ;;  %v162_v23 = vsel %vm161_vm2, %v159_v16, %v160_v15  ;;  %1527 = vmatprep.subr.mxu0 %v1414_v24  ;;  %v1413_v31 = vld [vmem:[#allocation6] ss:$0 sm:$0xff]  ;;  %v1423_v1 = vld [vmem:[#allocation8] ss:$0 sm:$0xff]  ;;  %s1762_s5 = scalar_lea.vmem %s1389_s4, 512 }
  0x61   :  { %v143_v5 = vand.u32 15, %v1912_v3  ;;  %vm1946_vm3 = vcmp.ge.s32.totalorder %v141_v4, 1  ;;  %1528 = vmatpush3.msra.mxu0 %v1414_v24  ;;  %1535 = vmatprep.subr.mxu1 %v410_v25  ;;  %v1430_v58 = vld [vmem:[%s2153_s7 + $0x8] sm:$0xff]  ;;  %vm2039_vm6 = vcmp.ge.s32.totalorder %v141_v4, 2  ;;  %vm731_vm7 = vcmp.lt.s32.totalorder %v1909_v2, 2  ;;  %p1763_p7 = scmp.ne.s32.totalorder %s1389_s4, %s1762_s5  ;;  %p1768_p9 = scmp.lt.s32.totalorder %s1762_s5, %s1762_s5 }
  0x62   :  { %v174_v21 = vsel %vm1946_vm3, %v165_v18, 0.0  ;;  %1517 = vmatmul.mubr.msk.f32.gmra.mxu0 %vm181_vm1, %v1935_v12  ;;  %1543 = vmatprep.subr.msk.mxu0 %vm194_vm0, %v623_v26 }
  0x63   :  { %vm1954_vm4 = vcmp.ge.s32.totalorder %v143_v5, 1  ;;  %1521 = vmatprep.mubr.msk.f32.mxu1 %vm181_vm1, %v174_v21  ;;  %vm2052_vm8 = vcmp.ge.s32.totalorder %v143_v5, 2  ;;  %p1769_p10 = por %p1768_p9, %p1767_p8 }
  0x64   :  { %v176_v22 = vsel %vm1954_vm4, %v163_v20, 0.0  ;;  %1522 = vmatmul.mubr.msk.f32.vlgmr.msra.gmra.mxu1 %vm181_vm1, %v164_v19 }
  0x65   :  { %1524 = vmatprep.mubr.msk.f32.mxu1 %vm181_vm1, %v176_v22  ;;  %1536 = vmatpush3.msra.mxu1 %v410_v25  ;;  %p1770_p11 = pnand %p1769_p10, %p1763_p7 }
  0x66   :  { %1551 = vmatprep.subr.mxu1 %v1430_v58 }
  0x68   :  { %1525 = vmatmul.mubr.msk.f32.gmra.mxu1 %vm181_vm1, %v162_v23 }
 0x11e   :  { %v1515_v27 = vpop.f32.mrf.mxu0 }
 0x120   :  { %v264_v28 = vpop.f32.mrf.mxu0 }
 0x122   :  { %v1518_v32 = vpop.f32.mrf.mxu0 }
 0x124   :  { %v1523_v29 = vpop.f32.mrf.mxu1  ;;  %v274_v39 = vpop.f32.mrf.mxu0 }
 0x125   :  { %v370_v30 = vadd.f32 %v1523_v29, %v1515_v27 }
 0x126   :  { %v364_v33 = vpop.f32.mrf.mxu1 }
 0x127   :  { %v365_v34 = vadd.f32 %v364_v33, %v264_v28  ;;  %v391_v35 = vadd.f32 %v1413_v31, %v370_v30 }
 0x128   :  { %v1526_v36 = vpop.f32.mrf.mxu1 }
 0x129   :  { %v390_v37 = vadd.f32 %v1413_v31, %v365_v34  ;;  %v380_v38 = vadd.f32 %v1526_v36, %v1518_v32  ;;  %v395_v44 = vmax.f32 %v391_v35, 0.0 }
 0x12a   :  { %v374_v40 = vpop.f32.mrf.mxu1 }
 0x12b   :  { %v394_v41 = vmax.f32 %v390_v37, 0.0  ;;  %v393_v42 = vadd.f32 %v1413_v31, %v380_v38  ;;  %v375_v43 = vadd.f32 %v374_v40, %v274_v39  ;;  %v399_v50 = vrot.slane %v395_v44, 7 }
 0x12d   :  { %v397_v45 = vmax.f32 %v393_v42, 0.0  ;;  %v392_v46 = vadd.f32 %v1413_v31, %v375_v43  ;;  %1529 = vmatprep.mubr.msk.f32.mxu0 %vm413_vm5, %v394_v41  ;;  %v398_v47 = vrot.slane %v394_v41, 7 }
 0x12e   :  { %1530 = vmatmul.mubr.msk.f32.vlgmr.msra.gmra.mxu0 %vm413_vm5, %v395_v44 }
 0x12f   :  { %v401_v48 = vrot.slane %v397_v45, 7  ;;  %v396_v49 = vmax.f32 %v392_v46, 0.0  ;;  %1544 = vmatpush3.msk.msra.mxu0 %vm194_vm0, %v623_v26  ;;  %v404_v54 = vsel %vm161_vm2, %v398_v47, %v399_v50 }
 0x130   :  { %1559 = vmatprep.subr.mxu0 %v748_v59 }
 0x131   :  { %v400_v51 = vrot.slane %v396_v49, 7  ;;  %1532 = vmatprep.mubr.msk.f32.mxu0 %vm413_vm5, %v396_v49  ;;  %v405_v52 = vsel %vm161_vm2, %v401_v48, %v398_v47  ;;  %v1440_v47 = vld [vmem:[%s2155_s9 + $0x8] sm:$0xff] }
 0x132   :  { %1533 = vmatmul.mubr.msk.f32.gmra.mxu0 %vm413_vm5, %v397_v45  ;;  %v406_v53 = vsel %vm1946_vm3, %v405_v52, 0.0 }
 0x133   :  { %1537 = vmatprep.mubr.msk.f32.mxu1 %vm413_vm5, %v406_v53  ;;  %v403_v55 = vsel %vm161_vm2, %v399_v50, %v400_v51  ;;  %1545 = vmatprep.mubr.msk.f32.mxu0 %vm181_vm1, %v1919_v7  ;;  %v402_v57 = vsel %vm161_vm2, %v400_v51, %v401_v48  ;;  %v1424_v7 = vld [vmem:[#allocation11] ss:$0 sm:$0xff]  ;;  %v972_v48 = vld [vmem:[%s2155_s9] sm:$0xff]  ;;  %v1439_v53 = vld [vmem:[#allocation12] ss:$0 sm:$0xff] }
 0x134   :  { %1538 = vmatmul.mubr.msk.f32.vlgmr.msra.gmra.mxu1 %vm413_vm5, %v404_v54  ;;  %v408_v56 = vsel %vm1954_vm4, %v403_v55, 0.0 }
 0x135   :  { %1540 = vmatprep.mubr.msk.f32.mxu1 %vm413_vm5, %v408_v56  ;;  %1552 = vmatpush3.msra.mxu1 %v1430_v58 }
 0x136   :  { %1546 = vmatmul.mubr.msk.f32.vlgmr.msra.gmra.mxu0 %vm181_vm1, %v1924_v8  ;;  %1567 = vmatprep.subr.mxu1 %v1440_v47 }
 0x137   :  { %1548 = vmatprep.mubr.msk.f32.mxu0 %vm181_vm1, %v1940_v13  ;;  %1560 = vmatpush3.msra.mxu0 %v748_v59 }
 0x138   :  { %1541 = vmatmul.mubr.msk.f32.gmra.mxu1 %vm413_vm5, %v402_v57  ;;  %1575 = vmatprep.subr.mxu0 %v972_v48 }
 0x13a   :  { %1549 = vmatmul.mubr.msk.f32.gmra.mxu0 %vm181_vm1, %v1935_v12 }
 0x1ee   :  { %v1531_v60 = vpop.f32.mrf.mxu0 }
 0x1f0   :  { %v492_v61 = vpop.f32.mrf.mxu0 }
 0x1f2   :  { %v1534_v62 = vpop.f32.mrf.mxu0 }
 0x1f4   :  { %v502_v63 = vpop.f32.mrf.mxu0  ;;  %v1539_v0 = vpop.f32.mrf.mxu1 }
 0x1f5   :  { %v595_v6 = vadd.f32 %v1539_v0, %v1531_v60 }
 0x1f6   :  { %v589_v8 = vpop.f32.mrf.mxu1  ;;  %v1547_v9 = vpop.f32.mrf.mxu0 }
 0x1f7   :  { %v616_v10 = vadd.f32 %v1423_v1, %v595_v6  ;;  %v590_v11 = vadd.f32 %v589_v8, %v492_v61  ;;  %v706_v12 = vadd.f32 %v1547_v9, %v1424_v7 }
 0x1f8   :  { %v1542_v13 = vpop.f32.mrf.mxu1  ;;  %v700_v14 = vpop.f32.mrf.mxu0 }
 0x1f9   :  { %v620_v15 = vmax.f32 %v616_v10, 0.0  ;;  %v615_v16 = vadd.f32 %v1423_v1, %v590_v11  ;;  %v605_v17 = vadd.f32 %v1542_v13, %v1534_v62  ;;  %v701_v22 = vadd.f32 %v1424_v7, %v700_v14 }
 0x1fa   :  { %v599_v18 = vpop.f32.mrf.mxu1  ;;  %v1550_v19 = vpop.f32.mrf.mxu0 }
 0x1fb   :  { %v619_v20 = vmax.f32 %v615_v16, 0.0  ;;  %v618_v21 = vadd.f32 %v1423_v1, %v605_v17  ;;  %v600_v23 = vadd.f32 %v599_v18, %v502_v63  ;;  %v720_v24 = vadd.f32 %v706_v12, %v620_v15 }
 0x1fc   :  { %v716_v25 = vadd.f32 %v1550_v19, %v1424_v7  ;;  %v710_v26 = vpop.f32.mrf.mxu0 }
 0x1fd   :  { %v622_v27 = vmax.f32 %v618_v21, 0.0  ;;  %v719_v28 = vadd.f32 %v701_v22, %v619_v20  ;;  %v617_v29 = vadd.f32 %v1423_v1, %v600_v23  ;;  %v711_v33 = vadd.f32 %v1424_v7, %v710_v26  ;;  %v1449_v23 = vld [vmem:[#allocation14] ss:$0 sm:$0xff] }
 0x1fe   :  { %v2025_v34 = vmax.f32 %v720_v24, 0.0 }
 0x1ff   :  { %v2023_v30 = vmax.f32 %v719_v28, 0.0  ;;  %v621_v31 = vmax.f32 %v617_v29, 0.0  ;;  %v722_v32 = vadd.f32 %v716_v25, %v622_v27 }
 0x200   :  { %v728_v41 = vrot.slane %v2025_v34, 6 }
 0x201   :  { %v2027_v35 = vmax.f32 %v722_v32, 0.0  ;;  %v721_v36 = vadd.f32 %v711_v33, %v621_v31  ;;  %1553 = vmatprep.mubr.msk.f32.mxu1 %vm413_vm5, %v2023_v30  ;;  %v727_v37 = vrot.slane %v2023_v30, 6 }
 0x202   :  { %1554 = vmatmul.mubr.msk.f32.vlgmr.msra.gmra.mxu1 %vm413_vm5, %v2025_v34 }
 0x203   :  { %v730_v38 = vrot.slane %v2027_v35, 6  ;;  %v2035_v39 = vmax.f32 %v721_v36, 0.0  ;;  %v734_v45 = vsel %vm731_vm7, %v727_v37, %v728_v41  ;;  %1568 = vmatpush3.msra.mxu1 %v1440_v47 }
 0x205   :  { %v729_v42 = vrot.slane %v2035_v39, 6  ;;  %1556 = vmatprep.mubr.msk.f32.mxu1 %vm413_vm5, %v2035_v39  ;;  %v735_v43 = vsel %vm731_vm7, %v730_v38, %v727_v37 }
 0x206   :  { %1557 = vmatmul.mubr.msk.f32.gmra.mxu1 %vm413_vm5, %v2027_v35  ;;  %v744_v4 = vsel %vm2039_vm6, %v735_v43, 0.0 }
 0x207   :  { %1561 = vmatprep.mubr.msk.f32.mxu0 %vm413_vm5, %v744_v4  ;;  %v733_v46 = vsel %vm731_vm7, %v728_v41, %v729_v42  ;;  %v732_v5 = vsel %vm731_vm7, %v729_v42, %v730_v38 }
 0x208   :  { %1562 = vmatmul.mubr.msk.f32.vlgmr.msra.gmra.mxu0 %vm413_vm5, %v734_v45  ;;  %v746_v3 = vsel %vm2052_vm8, %v733_v46, 0.0 }
 0x209   :  { %1564 = vmatprep.mubr.msk.f32.mxu0 %vm413_vm5, %v746_v3  ;;  %1576 = vmatpush3.msra.mxu0 %v972_v48 }
 0x20c   :  { %1565 = vmatmul.mubr.msk.f32.gmra.mxu0 %vm413_vm5, %v732_v5  ;;  %v1450_v5 = vld [vmem:[%s2157_s11] ss:$0 sm:$0xff] }
 0x2c2   :  { %v1555_v49 = vpop.f32.mrf.mxu1 }
 0x2c4   :  { %v829_v50 = vpop.f32.mrf.mxu1 }
 0x2c6   :  { %v1558_v54 = vpop.f32.mrf.mxu1 }
 0x2c8   :  { %v1563_v51 = vpop.f32.mrf.mxu0  ;;  %v839_v61 = vpop.f32.mrf.mxu1 }
 0x2c9   :  { %v932_v52 = vadd.f32 %v1563_v51, %v1555_v49 }
 0x2ca   :  { %v926_v55 = vpop.f32.mrf.mxu0 }
 0x2cb   :  { %v927_v56 = vadd.f32 %v926_v55, %v829_v50  ;;  %v953_v57 = vadd.f32 %v1439_v53, %v932_v52  ;;  %v1451_v55 = vld [vmem:[#allocation2] ss:$0 sm:$0xff] }
 0x2cc   :  { %v1566_v58 = vpop.f32.mrf.mxu0 }
 0x2cd   :  { %v952_v59 = vadd.f32 %v1439_v53, %v927_v56  ;;  %v942_v60 = vadd.f32 %v1566_v58, %v1558_v54  ;;  %v957_v6 = vmax.f32 %v953_v57, 0.0  ;;  %v1801_v54 = vmov 0  }
 0x2ce   :  { %v936_v62 = vpop.f32.mrf.mxu0  ;;  %1604 = vset.pattern.permute.xlu0 %v1801_v54  ;;  %1605 = vset.pattern.permute.xlu1 %v1801_v54 }
 0x2cf   :  { %v956_v63 = vmax.f32 %v952_v59, 0.0  ;;  %v955_v0 = vadd.f32 %v1439_v53, %v942_v60  ;;  %v937_v1 = vadd.f32 %v936_v62, %v839_v61  ;;  %v961_v12 = vrot.slane %v957_v6, 6 }
 0x2d1   :  { %v959_v7 = vmax.f32 %v955_v0, 0.0  ;;  %v954_v8 = vadd.f32 %v1439_v53, %v937_v1  ;;  %1569 = vmatprep.mubr.msk.f32.mxu1 %vm413_vm5, %v956_v63  ;;  %v960_v9 = vrot.slane %v956_v63, 6 }
 0x2d2   :  { %1570 = vmatmul.mubr.msk.f32.vlgmr.msra.gmra.mxu1 %vm413_vm5, %v957_v6 }
 0x2d3   :  { %v963_v10 = vrot.slane %v959_v7, 6  ;;  %v958_v11 = vmax.f32 %v954_v8, 0.0  ;;  %v966_v16 = vsel %vm731_vm7, %v960_v9, %v961_v12 }
 0x2d5   :  { %v962_v13 = vrot.slane %v958_v11, 6  ;;  %1572 = vmatprep.mubr.msk.f32.mxu1 %vm413_vm5, %v958_v11  ;;  %v967_v14 = vsel %vm731_vm7, %v963_v10, %v960_v9 }
 0x2d6   :  { %1573 = vmatmul.mubr.msk.f32.gmra.mxu1 %vm413_vm5, %v959_v7  ;;  %v968_v15 = vsel %vm2039_vm6, %v967_v14, 0.0 }
 0x2d7   :  { %1577 = vmatprep.mubr.msk.f32.mxu0 %vm413_vm5, %v968_v15  ;;  %v965_v17 = vsel %vm731_vm7, %v961_v12, %v962_v13  ;;  %v964_v19 = vsel %vm731_vm7, %v962_v13, %v963_v10 }
 0x2d8   :  { %1578 = vmatmul.mubr.msk.f32.vlgmr.msra.gmra.mxu0 %vm413_vm5, %v966_v16  ;;  %v970_v18 = vsel %vm2052_vm8, %v965_v17, 0.0  ;;  %v1274_v16 = vld [vmem:[%s2159_s13] sm:$0xff] }
 0x2d9   :  { %1580 = vmatprep.mubr.msk.f32.mxu0 %vm413_vm5, %v970_v18  ;;  %1583 = vmatprep.subr.mxu1 %v1274_v16 }
 0x2da   :  { %1584 = vmatpush3.msra.mxu1 %v1274_v16 }
 0x2dc   :  { %1581 = vmatmul.mubr.msk.f32.gmra.mxu0 %vm413_vm5, %v964_v19 }
 0x392   :  { %v1571_v20 = vpop.f32.mrf.mxu1 }
 0x394   :  { %v1053_v21 = vpop.f32.mrf.mxu1 }
 0x396   :  { %v1574_v25 = vpop.f32.mrf.mxu1 }
 0x398   :  { %v1579_v22 = vpop.f32.mrf.mxu0  ;;  %v1063_v36 = vpop.f32.mrf.mxu1 }
 0x399   :  { %v1156_v24 = vadd.f32 %v1579_v22, %v1571_v20 }
 0x39a   :  { %v1150_v26 = vpop.f32.mrf.mxu0 }
 0x39b   :  { %v1177_v27 = vadd.f32 %v1449_v23, %v1156_v24  ;;  %v1151_v28 = vadd.f32 %v1150_v26, %v1053_v21 }
 0x39c   :  { %v1582_v29 = vpop.f32.mrf.mxu0 }
 0x39d   :  { %v1181_v31 = vmax.f32 %v1177_v27, 0.0  ;;  %v1176_v32 = vadd.f32 %v1449_v23, %v1151_v28  ;;  %v1166_v33 = vadd.f32 %v1582_v29, %v1574_v25  ;;  %v1456_v29 = vld [vmem:[%s2160_s14] ss:$0 sm:$0xff] }
 0x39e   :  { %v1160_v37 = vpop.f32.mrf.mxu0 }
 0x39f   :  { %v1180_v38 = vmax.f32 %v1176_v32, 0.0  ;;  %v1179_v2 = vadd.f32 %v1449_v23, %v1166_v33  ;;  %v1161_v40 = vadd.f32 %v1160_v37, %v1063_v36  ;;  %v2099_v41 = vadd.f32 %v1181_v31, %v2025_v34 }
 0x3a1   :  { %v1183_v42 = vmax.f32 %v1179_v2, 0.0  ;;  %v1178_v43 = vadd.f32 %v1449_v23, %v1161_v40  ;;  %v2102_v44 = vadd.f32 %v1180_v38, %v2023_v30  ;;  %v1189_v46 = vmax.f32 %v2099_v41, 0.0 }
 0x3a3   :  { %v1182_v4 = vmax.f32 %v1178_v43, 0.0  ;;  %v1188_v45 = vmax.f32 %v2102_v44, 0.0  ;;  %v2107_v3 = vadd.f32 %v1183_v42, %v2027_v35  ;;  %v1200_v49 = vmul.f32 %v1450_v5, %v1189_v46 }
 0x3a5   :  { %v1199_v34 = vmul.f32 %v1450_v5, %v1188_v45  ;;  %v2115_v47 = vadd.f32 %v1182_v4, %v2035_v39  ;;  %v1191_v35 = vmax.f32 %v2107_v3, 0.0  ;;  %v1206_v52 = vsel %vm413_vm5, %v1200_v49, 0.0 }
 0x3a7   :  { %v1203_v30 = vsel %vm413_vm5, %v1199_v34, 0.0  ;;  %v1190_v48 = vmax.f32 %v2115_v47, 0.0  ;;  %v1202_v53 = vmul.f32 %v1450_v5, %v1191_v35 }
 0x3a8   :  { %1204 = vadd.xlane.f32.xlu0 %v1203_v30 }
 0x3a9   :  { %v1201_v50 = vmul.f32 %v1450_v5, %v1190_v48  ;;  %v1212_v39 = vsel %vm413_vm5, %v1202_v53, 0.0 }
 0x3ab   :  { %v1209_v51 = vsel %vm413_vm5, %v1201_v50, 0.0 }
 0x3ac   :  { %1210 = vadd.xlane.f32.xlu1 %v1209_v51  ;;  %1207 = vadd.xlane.f32.xlu0 %v1206_v52 }
 0x3b0   :  { %1213 = vadd.xlane.f32.xlu1 %v1212_v39 }
 0x431   :  { %v1205_v56 = vpop.xlane.xlu0 %1204 }
 0x432   :  { %v1222_v57 = vadd.f32 %v1451_v55, %v1205_v56 }
 0x434   :  { %v1452_v58 = vmul.f32 -1.442695, %v1222_v57 }
 0x435   :  { %v1211_v59 = vpop.xlane.xlu1 %1210  ;;  %v1208_v60 = vpop.xlane.xlu0 %1207 }
 0x436   :  { %1606 = vpow2.f32 %v1452_v58  ;;  %v1224_v61 = vadd.f32 %v1451_v55, %v1211_v59  ;;  %v1223_v62 = vadd.f32 %v1451_v55, %v1208_v60 }
 0x438   :  { %v1454_v63 = vmul.f32 -1.442695, %v1224_v61  ;;  %v1453_v0 = vmul.f32 -1.442695, %v1223_v62 }
 0x439   :  { %v1214_v1 = vpop.xlane.xlu1 %1213 }
 0x43a   :  { %1608 = vpow2.f32 %v1454_v63  ;;  %v1225_v6 = vadd.f32 %v1451_v55, %v1214_v1 }
 0x43b   :  { %1610 = vpow2.f32 %v1453_v0 }
 0x43c   :  { %v1455_v7 = vmul.f32 -1.442695, %v1225_v6 }
 0x43e   :  { %1612 = vpow2.f32 %v1455_v7 }
 0x443   :  { %v1607_v8 = vpop.eup %1606 }
 0x444   :  { %v1238_v9 = vadd.f32 1.0, %v1607_v8 }
 0x446   :  { %1614 = vrcp.f32 %v1238_v9 }
 0x447   :  { %v1609_v10 = vpop.eup %1608 }
 0x448   :  { %v1611_v11 = vpop.eup %1610  ;;  %v1240_v13 = vadd.f32 1.0, %v1609_v10 }
 0x449   :  { %v1239_v12 = vadd.f32 1.0, %v1611_v11 }
 0x44b   :  { %1616 = vrcp.f32 %v1239_v12  ;;  %v1613_v14 = vpop.eup %1612 }
 0x44c   :  { %1618 = vrcp.f32 %v1240_v13  ;;  %v1241_v15 = vadd.f32 1.0, %v1613_v14 }
 0x44e   :  { %1620 = vrcp.f32 %v1241_v15 }
 0x453   :  { %v1615_v17 = vpop.eup %1614 }
 0x454   :  { %1252 = vperm.xlu0 %1604, %v1615_v17  }
 0x458   :  { %v1617_v18 = vpop.eup %1616 }
 0x459   :  { %1257 = vperm.xlu1 %1605, %v1617_v18   ;;  %v1619_v19 = vpop.eup %1618 }
 0x45b   :  { %v1621_v20 = vpop.eup %1620 }
 0x45d   :  { %1262 = vperm.xlu1 %1605, %v1619_v19  }
 0x461   :  { %1267 = vperm.xlu1 %1605, %v1621_v20  }
 0x4cf   :  { %v1253_v21 = vpop.permute.xlu0 %1252 }
 0x4d0   :  { %v1270_v22 = vmul.f32 %v1253_v21, %v1188_v45 }
 0x4d2   :  { %1585 = vmatprep.mubr.msk.f32.mxu1 %vm413_vm5, %v1270_v22 }
 0x4d4   :  { %v1258_v23 = vpop.permute.xlu1 %1257 }
 0x4d5   :  { %v1271_v24 = vmul.f32 %v1258_v23, %v1189_v46 }
 0x4d7   :  { %1586 = vmatmul.mubr.msk.f32.vlgmr.msra.gmra.mxu1 %vm413_vm5, %v1271_v24 }
 0x4d8   :  { %v1263_v25 = vpop.permute.xlu1 %1262 }
 0x4d9   :  { %v1272_v26 = vmul.f32 %v1263_v25, %v1190_v48 }
 0x4db   :  { %1588 = vmatprep.mubr.msk.f32.mxu1 %vm413_vm5, %v1272_v26 }
 0x4dc   :  { %v1268_v27 = vpop.permute.xlu1 %1267 }
 0x4dd   :  { %v1273_v28 = vmul.f32 %v1268_v27, %v1191_v35 }
 0x4df   :  { %1589 = vmatmul.mubr.msk.f32.gmra.mxu1 %vm413_vm5, %v1273_v28 }
 0x597   :  { %v1587_v31 = vpop.f32.mrf.mxu1 }
 0x598   :  { %v1366_v32 = vadd.f32 %v1587_v31, %v1456_v29 }
 0x599   :  { %v1360_v33 = vpop.f32.mrf.mxu1 }
 0x59a   :  { %1380 = vst [vmem:[#allocation15 + $0x8] sm:$0xff] %v1366_v32  ;;  %v1361_v36 = vadd.f32 %v1456_v29, %v1360_v33 }
 0x59c   :  { %1379 = vst [vmem:[#allocation15] sm:$0xff] %v1361_v36 }
 0x59f   :  { %v1590_v37 = vpop.f32.mrf.mxu1 }
 0x5a0   :  { %v1376_v38 = vadd.f32 %v1590_v37, %v1456_v29 }
 0x5a1   :  { %v1370_v2 = vpop.f32.mrf.mxu1 }
 0x5a2   :  { %1382 = vst [vmem:[#allocation15 + $0x18] sm:$0xff] %v1376_v38  ;;  %v1371_v40 = vadd.f32 %v1456_v29, %v1370_v2 }
 0x5a4   :  { %1381 = vst [vmem:[#allocation15 + $0x10] sm:$0xff] %v1371_v40 }
 0x5a5   :  { %1773 = shalt.err (!%p1770_p11)
}
 0x5a6   :  { %s1803_s14 = smov 128   ;;  %s1804_s6 = smov 8  }
 0x5a7   :  { %1394 = dma.vmem_to_hbm [thread:$0]  %s1389_s4, 512, %s2161_s15, [#allocation5], %s1803_s14, %s1803_s14, %s1804_s6  }
 0x5a8   :  { %1790 = dma.done.wait [#allocation5], 512  }
 0x5a9   :  { %1791 = vsyncadd [#allocation5], 4294966784 }
 0x5aa   :  { %1398 = vsyncpa [#allocation4], 1 }
 0x5ab   :  { %1399 = vsyncpa [#allocation7], 1 }
 0x5ac   :  { %1400 = vsyncpa [#allocation10], 1 }
 0x5ad   :  { %1401 = vsyncpa [#allocation13], 1 }
 0x5ae   :  { %1402 = vsyncpa [#allocation5], 1 }

// kernel: tpu_custom_call.1
= control target key start
LH: loop header
LB: loop body
LE: loop exit
PB: predicated region body
PF: predicated region fallthrough
CT: control target
= control target key end

     0   :  { %s2146_s0 = inlined_call_operand.vmem [shape: f32[32,4], index: 0, kind: input, shape index: {}]   ;;  %s2147_s1 = inlined_call_operand.hbm [shape: f32[2,4,8], index: 1, kind: input, shape index: {}]   ;;  %s2148_s2 = inlined_call_operand.hbm [shape: f32[1,8], index: 2, kind: input, shape index: {}]   ;;  %s2149_s3 = inlined_call_operand.vmem [shape: f32[2,8,8], index: 3, kind: input, shape index: {}]   ;;  %s2150_s4 = inlined_call_operand.hbm [shape: f32[1,8], index: 4, kind: input, shape index: {}]   ;;  %s2151_s5 = inlined_call_operand.hbm [shape: f32[4,8], index: 5, kind: input, shape index: {}]   ;;  %s2152_s6 = inlined_call_operand.hbm [shape: f32[1,8], index: 6, kind: input, shape index: {}]   ;;  %s2153_s7 = inlined_call_operand.vmem [shape: f32[2,8,8], index: 7, kind: input, shape index: {}]   ;;  %s2154_s8 = inlined_call_operand.hbm [shape: f32[1,8], index: 8, kind: input, shape index: {}]   ;;  %s2155_s9 = inlined_call_operand.vmem [shape: f32[2,8,8], index: 9, kind: input, shape index: {}]   ;;  %s2156_s10 = inlined_call_operand.hbm [shape: f32[1,8], index: 10, kind: input, shape index: {}]   ;;  %s2157_s11 = inlined_call_operand.vmem [shape: f32[1,8], index: 11, kind: input, shape index: {}]   ;;  %s2158_s12 = inlined_call_operand.<no memory space> [shape: f32[1,1], index: 12, kind: input, shape index: {}]   ;;  %s2159_s13 = inlined_call_operand.vmem [shape: f32[8,128], index: 13, kind: input, shape index: {}]   ;;  %s2160_s14 = inlined_call_operand.vmem [shape: f32[1,128], index: 14, kind: input, shape index: {}]   ;;  %s2161_s15 = inlined_call_operand.hbm [shape: f32[32,128], index: 15, kind: output, shape index: {}]  }
   0x1   :  { %v20_v0 = vstv %s2158_s12 }
   0x2   :  { %21 = vst [vmem:[#allocation2] sm:$0x1] %v20_v0 }
   0x3   :  { %22 = vsyncpa [#allocation4], 0 }
   0x4   :  { %23 = vsyncpa [#allocation7], 0 }
   0x5   :  { %24 = vsyncpa [#allocation10], 0 }
   0x6   :  { %25 = vsyncpa [#allocation13], 0 }
   0x7   :  { %26 = vsyncpa [#allocation5], 0  ;;  %s1792_s20 = smov [#allocation6]   ;;  %s1793_s22 = smov [#allocation9]  }
   0x8   :  { %s47_s21 = sshll.u32 %s1792_s20, 4  ;;  %s69_s23 = sshll.u32 %s1793_s22, 4  ;;  %s48_s21 = int_to_ptr.vmem [resolvable:$true] %s47_s21  ;;  %s70_s23 = int_to_ptr.vmem [resolvable:$true] %s69_s23 }
   0x9   :  { %s1630_s24 = scalar_lea.vmem %s48_s21, 16  ;;  %s1634_s25 = scalar_lea.vmem %s48_s21, 32 }
   0xa   :  { %p1631_p0 = scmp.ne.s32.totalorder %s48_s21, %s1630_s24  ;;  %p1635_p1 = scmp.lt.s32.totalorder %s48_s21, %s48_s21 }
   0xb   :  { %p1636_p2 = scmp.lt.s32.totalorder %s1634_s25, %s1630_s24 }
   0xd   :  { %p1637_p3 = por %p1636_p2, %p1635_p1 }
   0xf   :  { %p1638_p4 = pnand %p1637_p3, %p1631_p0 }
  0x11   :  { %1641 = shalt.err (!%p1638_p4)
}
  0x12   :  { %50 = dma.hbm_to_vmem [thread:$0]  %s2148_s2, 16, %s48_s21, [#allocation7]  }
  0x13   :  { %s1650_s27 = scalar_lea.vmem %s70_s23, 64  ;;  %p1655_p6 = scmp.lt.s32.totalorder %s70_s23, %s70_s23 }
  0x14   :  { %p1651_p5 = scmp.ne.s32.totalorder %s70_s23, %s1650_s27  ;;  %p1656_p7 = scmp.lt.s32.totalorder %s1650_s27, %s1650_s27 }
  0x16   :  { %p1657_p8 = por %p1656_p7, %p1655_p6 }
  0x18   :  { %p1658_p9 = pnand %p1657_p8, %p1651_p5 }
  0x1a   :  { %1661 = shalt.err (!%p1658_p9)
}
  0x1b   :  { %72 = dma.hbm_to_vmem [thread:$0]  %s2151_s5, 64, %s70_s23, [#allocation10]  }
  0x1c   :  { %s1794_s30 = smov [#allocation12]   ;;  %s1795_s17 = smov [#allocation3]  }
  0x1d   :  { %s91_s16 = sshll.u32 %s1794_s30, 4  ;;  %s34_s18 = sshll.u32 %s1795_s17, 4  ;;  %s92_s16 = int_to_ptr.vmem [resolvable:$true] %s91_s16  ;;  %s35_s18 = int_to_ptr.vmem [resolvable:$true] %s34_s18 }
  0x1e   :  { %s1670_s19 = scalar_lea.vmem %s92_s16, 16  ;;  %s1674_s2 = scalar_lea.vmem %s92_s16, 32 }
  0x1f   :  { %p1671_p10 = scmp.ne.s32.totalorder %s92_s16, %s1670_s19  ;;  %p1675_p11 = scmp.lt.s32.totalorder %s92_s16, %s92_s16 }
  0x20   :  { %p1676_p12 = scmp.lt.s32.totalorder %s1674_s2, %s1670_s19 }
  0x22   :  { %p1677_p13 = por %p1676_p12, %p1675_p11 }
  0x24   :  { %p1678_p0 = pnand %p1677_p13, %p1671_p10 }
  0x26   :  { %1681 = shalt.err (!%p1678_p0)
}
  0x27   :  { %94 = dma.hbm_to_vmem [thread:$0]  %s2154_s8, 16, %s92_s16, [#allocation13]  }
  0x28   :  { %s1690_s22 = scalar_lea.vmem %s35_s18, 128  ;;  %p1695_p2 = scmp.lt.s32.totalorder %s35_s18, %s35_s18 }
  0x29   :  { %p1691_p1 = scmp.ne.s32.totalorder %s35_s18, %s1690_s22  ;;  %p1696_p3 = scmp.lt.s32.totalorder %s1690_s22, %s1690_s22 }
  0x2b   :  { %p1697_p4 = por %p1696_p3, %p1695_p2 }
  0x2d   :  { %p1698_p5 = pnand %p1697_p4, %p1691_p1 }
  0x2f   :  { %1701 = shalt.err (!%p1698_p5)
}
  0x30   :  { %s1796_s5 = smov 64   ;;  %s1797_s23 = smov 4  }
  0x31   :  { %40 = dma.hbm_to_vmem [thread:$0]  %s2147_s1, 128, %s35_s18, [#allocation4], %s1796_s5, %s1796_s5, %s1797_s23  }
  0x32   :  { %s1798_s12 = smov [#allocation8]   ;;  %s1799_s27 = smov [#allocation11]  }
  0x33   :  { %s59_s26 = sshll.u32 %s1798_s12, 4  ;;  %s79_s28 = sshll.u32 %s1799_s27, 4  ;;  %s60_s26 = int_to_ptr.vmem [resolvable:$true] %s59_s26  ;;  %s80_s28 = int_to_ptr.vmem [resolvable:$true] %s79_s28 }
  0x34   :  { %s1710_s8 = scalar_lea.vmem %s60_s26, 16  ;;  %s1714_s29 = scalar_lea.vmem %s60_s26, 32 }
  0x35   :  { %p1711_p6 = scmp.ne.s32.totalorder %s60_s26, %s1710_s8  ;;  %p1715_p7 = scmp.lt.s32.totalorder %s60_s26, %s60_s26 }
  0x36   :  { %p1716_p8 = scmp.lt.s32.totalorder %s1714_s29, %s1710_s8 }
  0x38   :  { %p1717_p9 = por %p1716_p8, %p1715_p7 }
  0x3a   :  { %p1718_p10 = pnand %p1717_p9, %p1711_p6 }
  0x3c   :  { %1721 = shalt.err (!%p1718_p10)
}
  0x3d   :  { %62 = dma.hbm_to_vmem [thread:$0]  %s2150_s4, 16, %s60_s26, [#allocation7]  }
  0x3e   :  { %s1730_s17 = scalar_lea.vmem %s80_s28, 16  ;;  %s1734_s1 = scalar_lea.vmem %s80_s28, 32 }
  0x3f   :  { %p1731_p11 = scmp.ne.s32.totalorder %s80_s28, %s1730_s17  ;;  %p1735_p12 = scmp.lt.s32.totalorder %s80_s28, %s80_s28 }
  0x40   :  { %p1736_p13 = scmp.lt.s32.totalorder %s1734_s1, %s1730_s17 }
  0x42   :  { %p1737_p0 = por %p1736_p13, %p1735_p12 }
  0x44   :  { %p1738_p1 = pnand %p1737_p0, %p1731_p11 }
  0x46   :  { %1741 = shalt.err (!%p1738_p1)
}
  0x47   :  { %82 = dma.hbm_to_vmem [thread:$0]  %s2152_s6, 16, %s80_s28, [#allocation10]  }
  0x48   :  { %s1800_s2 = smov [#allocation14]  }
  0x49   :  { %s103_s20 = sshll.u32 %s1800_s2, 4  ;;  %s104_s20 = int_to_ptr.vmem [resolvable:$true] %s103_s20 }
  0x4a   :  { %s1750_s21 = scalar_lea.vmem %s104_s20, 16  ;;  %s1754_s22 = scalar_lea.vmem %s104_s20, 32 }
  0x4b   :  { %p1751_p2 = scmp.ne.s32.totalorder %s104_s20, %s1750_s21  ;;  %p1755_p3 = scmp.lt.s32.totalorder %s104_s20, %s104_s20 }
  0x4c   :  { %p1756_p4 = scmp.lt.s32.totalorder %s1754_s22, %s1750_s21 }
  0x4e   :  { %p1757_p5 = por %p1756_p4, %p1755_p3 }
  0x50   :  { %p1758_p6 = pnand %p1757_p5, %p1751_p2 }
  0x52   :  { %1761 = shalt.err (!%p1758_p6)
}
  0x53   :  { %106 = dma.hbm_to_vmem [thread:$0]  %s2156_s10, 16, %s104_s20, [#allocation13]  }
  0x54   :  { %1782 = dma.done.wait [#allocation4], 128  }
  0x55   :  { %1783 = vsyncadd [#allocation4], 4294967168 }
  0x56   :  { %1784 = dma.done.wait [#allocation7], 32  }
  0x57   :  { %1785 = vsyncadd [#allocation7], 4294967264 }
  0x58   :  { %1786 = dma.done.wait [#allocation10], 80  }
  0x59   :  { %1787 = vsyncadd [#allocation10], 4294967216 }
  0x5a   :  { %1788 = dma.done.wait [#allocation13], 32  }
  0x5b   :  { %1789 = vsyncadd [#allocation13], 4294967264  ;;  %v136_v1 = vlaneseq  ;;  %vm194_vm0 = vcmask 1043456   ;;  %vm181_vm1 = vcmask 31744   ;;  %v180_v6 = vld [vmem:[#allocation3 + $0x4] sm:$0xf] }
  0x5c   :  { %v1919_v7 = vld [vmem:[%s2146_s0] sm:$0xff]  ;;  %v1924_v8 = vld [vmem:[%s2146_s0 + $0x8] sm:$0xff]  ;;  %1511 = vmatprep.subr.msk.mxu0 %vm194_vm0, %v180_v6  ;;  %v1935_v12 = vld [vmem:[%s2146_s0 + $0x18] sm:$0xff]  ;;  %vm413_vm5 = vcmask 64512   ;;  %s1802_s22 = smov [#allocation15]  }
  0x5d   :  { %v1909_v2 = vshrl.u32 %v136_v1, 7  ;;  %v157_v9 = vrot.slane %v1919_v7, 7  ;;  %1513 = vmatprep.mubr.msk.f32.mxu0 %vm181_vm1, %v1919_v7  ;;  %v158_v10 = vrot.slane %v1924_v8, 7  ;;  %v178_v11 = vld [vmem:[#allocation3] sm:$0xf]  ;;  %v1940_v13 = vld [vmem:[%s2146_s0 + $0x10] sm:$0xff]  ;;  %1512 = vmatpush3.msk.msra.mxu0 %vm194_vm0, %v180_v6 }
  0x5e   :  { %1519 = vmatprep.subr.msk.mxu1 %vm194_vm0, %v178_v11  ;;  %v160_v15 = vrot.slane %v1935_v12, 7  ;;  %v159_v16 = vrot.slane %v1940_v13, 7  ;;  %1514 = vmatmul.mubr.msk.f32.vlgmr.msra.gmra.mxu0 %vm181_vm1, %v1924_v8  ;;  %v1414_v24 = vld [vmem:[%s2149_s3 + $0x8] sm:$0xff]  ;;  %v410_v25 = vld [vmem:[%s2149_s3] sm:$0xff]  ;;  %s1388_s4 = sshll.u32 %s1802_s22, 4  ;;  %s1389_s4 = int_to_ptr.vmem [resolvable:$true] %s1388_s4 }
  0x5f   :  { %v1912_v3 = vadd.s32 16, %v1909_v2  ;;  %v141_v4 = vand.u32 15, %v1909_v2  ;;  %vm161_vm2 = vcmp.lt.s32.totalorder %v1909_v2, 1  ;;  %1520 = vmatpush3.msk.msra.mxu1 %vm194_vm0, %v178_v11  ;;  %1516 = vmatprep.mubr.msk.f32.mxu0 %vm181_vm1, %v1940_v13  ;;  %v623_v26 = vld [vmem:[#allocation9] sm:$0xf]  ;;  %v748_v59 = vld [vmem:[%s2153_s7] sm:$0xff]  ;;  %p1767_p8 = scmp.lt.s32.totalorder %s1389_s4, %s1389_s4 }
  0x60   :  { %v165_v18 = vsel %vm161_vm2, %v160_v15, %v157_v9  ;;  %v164_v19 = vsel %vm161_vm2, %v157_v9, %v158_v10  ;;  %v163_v20 = vsel %vm161_vm2, %v158_v10, %v159_v16  ;;  %v162_v23 = vsel %vm161_vm2, %v159_v16, %v160_v15  ;;  %1527 = vmatprep.subr.mxu0 %v1414_v24  ;;  %v1413_v31 = vld [vmem:[#allocation6] ss:$0 sm:$0xff]  ;;  %v1423_v1 = vld [vmem:[#allocation8] ss:$0 sm:$0xff]  ;;  %s1762_s5 = scalar_lea.vmem %s1389_s4, 512 }
  0x61   :  { %v143_v5 = vand.u32 15, %v1912_v3  ;;  %vm1946_vm3 = vcmp.ge.s32.totalorder %v141_v4, 1  ;;  %1528 = vmatpush3.msra.mxu0 %v1414_v24  ;;  %1535 = vmatprep.subr.mxu1 %v410_v25  ;;  %v1430_v58 = vld [vmem:[%s2153_s7 + $0x8] sm:$0xff]  ;;  %vm2039_vm6 = vcmp.ge.s32.totalorder %v141_v4, 2  ;;  %vm731_vm7 = vcmp.lt.s32.totalorder %v1909_v2, 2  ;;  %p1763_p7 = scmp.ne.s32.totalorder %s1389_s4, %s1762_s5  ;;  %p1768_p9 = scmp.lt.s32.totalorder %s1762_s5, %s1762_s5 }
  0x62   :  { %v174_v21 = vsel %vm1946_vm3, %v165_v18, 0.0  ;;  %1517 = vmatmul.mubr.msk.f32.gmra.mxu0 %vm181_vm1, %v1935_v12  ;;  %1543 = vmatprep.subr.msk.mxu0 %vm194_vm0, %v623_v26 }
  0x63   :  { %vm1954_vm4 = vcmp.ge.s32.totalorder %v143_v5, 1  ;;  %1521 = vmatprep.mubr.msk.f32.mxu1 %vm181_vm1, %v174_v21  ;;  %vm2052_vm8 = vcmp.ge.s32.totalorder %v143_v5, 2  ;;  %p1769_p10 = por %p1768_p9, %p1767_p8 }
  0x64   :  { %v176_v22 = vsel %vm1954_vm4, %v163_v20, 0.0  ;;  %1522 = vmatmul.mubr.msk.f32.vlgmr.msra.gmra.mxu1 %vm181_vm1, %v164_v19 }
  0x65   :  { %1524 = vmatprep.mubr.msk.f32.mxu1 %vm181_vm1, %v176_v22  ;;  %1536 = vmatpush3.msra.mxu1 %v410_v25  ;;  %p1770_p11 = pnand %p1769_p10, %p1763_p7 }
  0x66   :  { %1551 = vmatprep.subr.mxu1 %v1430_v58 }
  0x68   :  { %1525 = vmatmul.mubr.msk.f32.gmra.mxu1 %vm181_vm1, %v162_v23 }
 0x11e   :  { %v1515_v27 = vpop.f32.mrf.mxu0 }
 0x120   :  { %v264_v28 = vpop.f32.mrf.mxu0 }
 0x122   :  { %v1518_v32 = vpop.f32.mrf.mxu0 }
 0x124   :  { %v1523_v29 = vpop.f32.mrf.mxu1  ;;  %v274_v39 = vpop.f32.mrf.mxu0 }
 0x125   :  { %v370_v30 = vadd.f32 %v1523_v29, %v1515_v27 }
 0x126   :  { %v364_v33 = vpop.f32.mrf.mxu1 }
 0x127   :  { %v365_v34 = vadd.f32 %v364_v33, %v264_v28  ;;  %v391_v35 = vadd.f32 %v1413_v31, %v370_v30 }
 0x128   :  { %v1526_v36 = vpop.f32.mrf.mxu1 }
 0x129   :  { %v390_v37 = vadd.f32 %v1413_v31, %v365_v34  ;;  %v380_v38 = vadd.f32 %v1526_v36, %v1518_v32  ;;  %v395_v44 = vmax.f32 %v391_v35, 0.0 }
 0x12a   :  { %v374_v40 = vpop.f32.mrf.mxu1 }
 0x12b   :  { %v394_v41 = vmax.f32 %v390_v37, 0.0  ;;  %v393_v42 = vadd.f32 %v1413_v31, %v380_v38  ;;  %v375_v43 = vadd.f32 %v374_v40, %v274_v39  ;;  %v399_v50 = vrot.slane %v395_v44, 7 }
 0x12d   :  { %v397_v45 = vmax.f32 %v393_v42, 0.0  ;;  %v392_v46 = vadd.f32 %v1413_v31, %v375_v43  ;;  %1529 = vmatprep.mubr.msk.f32.mxu0 %vm413_vm5, %v394_v41  ;;  %v398_v47 = vrot.slane %v394_v41, 7 }
 0x12e   :  { %1530 = vmatmul.mubr.msk.f32.vlgmr.msra.gmra.mxu0 %vm413_vm5, %v395_v44 }
 0x12f   :  { %v401_v48 = vrot.slane %v397_v45, 7  ;;  %v396_v49 = vmax.f32 %v392_v46, 0.0  ;;  %1544 = vmatpush3.msk.msra.mxu0 %vm194_vm0, %v623_v26  ;;  %v404_v54 = vsel %vm161_vm2, %v398_v47, %v399_v50 }
 0x130   :  { %1559 = vmatprep.subr.mxu0 %v748_v59 }
 0x131   :  { %v400_v51 = vrot.slane %v396_v49, 7  ;;  %1532 = vmatprep.mubr.msk.f32.mxu0 %vm413_vm5, %v396_v49  ;;  %v405_v52 = vsel %vm161_vm2, %v401_v48, %v398_v47  ;;  %v1440_v47 = vld [vmem:[%s2155_s9 + $0x8] sm:$0xff] }
 0x132   :  { %1533 = vmatmul.mubr.msk.f32.gmra.mxu0 %vm413_vm5, %v397_v45  ;;  %v406_v53 = vsel %vm1946_vm3, %v405_v52, 0.0 }
 0x133   :  { %1537 = vmatprep.mubr.msk.f32.mxu1 %vm413_vm5, %v406_v53  ;;  %v403_v55 = vsel %vm161_vm2, %v399_v50, %v400_v51  ;;  %1545 = vmatprep.mubr.msk.f32.mxu0 %vm181_vm1, %v1919_v7  ;;  %v402_v57 = vsel %vm161_vm2, %v400_v51, %v401_v48  ;;  %v1424_v7 = vld [vmem:[#allocation11] ss:$0 sm:$0xff]  ;;  %v972_v48 = vld [vmem:[%s2155_s9] sm:$0xff]  ;;  %v1439_v53 = vld [vmem:[#allocation12] ss:$0 sm:$0xff] }
 0x134   :  { %1538 = vmatmul.mubr.msk.f32.vlgmr.msra.gmra.mxu1 %vm413_vm5, %v404_v54  ;;  %v408_v56 = vsel %vm1954_vm4, %v403_v55, 0.0 }
 0x135   :  { %1540 = vmatprep.mubr.msk.f32.mxu1 %vm413_vm5, %v408_v56  ;;  %1552 = vmatpush3.msra.mxu1 %v1430_v58 }
 0x136   :  { %1546 = vmatmul.mubr.msk.f32.vlgmr.msra.gmra.mxu0 %vm181_vm1, %v1924_v8  ;;  %1567 = vmatprep.subr.mxu1 %v1440_v47 }
 0x137   :  { %1548 = vmatprep.mubr.msk.f32.mxu0 %vm181_vm1, %v1940_v13  ;;  %1560 = vmatpush3.msra.mxu0 %v748_v59 }
 0x138   :  { %1541 = vmatmul.mubr.msk.f32.gmra.mxu1 %vm413_vm5, %v402_v57  ;;  %1575 = vmatprep.subr.mxu0 %v972_v48 }
 0x13a   :  { %1549 = vmatmul.mubr.msk.f32.gmra.mxu0 %vm181_vm1, %v1935_v12 }
 0x1ee   :  { %v1531_v60 = vpop.f32.mrf.mxu0 }
 0x1f0   :  { %v492_v61 = vpop.f32.mrf.mxu0 }
 0x1f2   :  { %v1534_v62 = vpop.f32.mrf.mxu0 }
 0x1f4   :  { %v502_v63 = vpop.f32.mrf.mxu0  ;;  %v1539_v0 = vpop.f32.mrf.mxu1 }
 0x1f5   :  { %v595_v6 = vadd.f32 %v1539_v0, %v1531_v60 }
 0x1f6   :  { %v589_v8 = vpop.f32.mrf.mxu1  ;;  %v1547_v9 = vpop.f32.mrf.mxu0 }
 0x1f7   :  { %v616_v10 = vadd.f32 %v1423_v1, %v595_v6  ;;  %v590_v11 = vadd.f32 %v589_v8, %v492_v61  ;;  %v706_v12 = vadd.f32 %v1547_v9, %v1424_v7 }
 0x1f8   :  { %v1542_v13 = vpop.f32.mrf.mxu1  ;;  %v700_v14 = vpop.f32.mrf.mxu0 }
 0x1f9   :  { %v620_v15 = vmax.f32 %v616_v10, 0.0  ;;  %v615_v16 = vadd.f32 %v1423_v1, %v590_v11  ;;  %v605_v17 = vadd.f32 %v1542_v13, %v1534_v62  ;;  %v701_v22 = vadd.f32 %v1424_v7, %v700_v14 }
 0x1fa   :  { %v599_v18 = vpop.f32.mrf.mxu1  ;;  %v1550_v19 = vpop.f32.mrf.mxu0 }
 0x1fb   :  { %v619_v20 = vmax.f32 %v615_v16, 0.0  ;;  %v618_v21 = vadd.f32 %v1423_v1, %v605_v17  ;;  %v600_v23 = vadd.f32 %v599_v18, %v502_v63  ;;  %v720_v24 = vadd.f32 %v706_v12, %v620_v15 }
 0x1fc   :  { %v716_v25 = vadd.f32 %v1550_v19, %v1424_v7  ;;  %v710_v26 = vpop.f32.mrf.mxu0 }
 0x1fd   :  { %v622_v27 = vmax.f32 %v618_v21, 0.0  ;;  %v719_v28 = vadd.f32 %v701_v22, %v619_v20  ;;  %v617_v29 = vadd.f32 %v1423_v1, %v600_v23  ;;  %v711_v33 = vadd.f32 %v1424_v7, %v710_v26  ;;  %v1449_v23 = vld [vmem:[#allocation14] ss:$0 sm:$0xff] }
 0x1fe   :  { %v2025_v34 = vmax.f32 %v720_v24, 0.0 }
 0x1ff   :  { %v2023_v30 = vmax.f32 %v719_v28, 0.0  ;;  %v621_v31 = vmax.f32 %v617_v29, 0.0  ;;  %v722_v32 = vadd.f32 %v716_v25, %v622_v27 }
 0x200   :  { %v728_v41 = vrot.slane %v2025_v34, 6 }
 0x201   :  { %v2027_v35 = vmax.f32 %v722_v32, 0.0  ;;  %v721_v36 = vadd.f32 %v711_v33, %v621_v31  ;;  %1553 = vmatprep.mubr.msk.f32.mxu1 %vm413_vm5, %v2023_v30  ;;  %v727_v37 = vrot.slane %v2023_v30, 6 }
 0x202   :  { %1554 = vmatmul.mubr.msk.f32.vlgmr.msra.gmra.mxu1 %vm413_vm5, %v2025_v34 }
 0x203   :  { %v730_v38 = vrot.slane %v2027_v35, 6  ;;  %v2035_v39 = vmax.f32 %v721_v36, 0.0  ;;  %v734_v45 = vsel %vm731_vm7, %v727_v37, %v728_v41  ;;  %1568 = vmatpush3.msra.mxu1 %v1440_v47 }
 0x205   :  { %v729_v42 = vrot.slane %v2035_v39, 6  ;;  %1556 = vmatprep.mubr.msk.f32.mxu1 %vm413_vm5, %v2035_v39  ;;  %v735_v43 = vsel %vm731_vm7, %v730_v38, %v727_v37 }
 0x206   :  { %1557 = vmatmul.mubr.msk.f32.gmra.mxu1 %vm413_vm5, %v2027_v35  ;;  %v744_v4 = vsel %vm2039_vm6, %v735_v43, 0.0 }
 0x207   :  { %1561 = vmatprep.mubr.msk.f32.mxu0 %vm413_vm5, %v744_v4  ;;  %v733_v46 = vsel %vm731_vm7, %v728_v41, %v729_v42  ;;  %v732_v5 = vsel %vm731_vm7, %v729_v42, %v730_v38 }
 0x208   :  { %1562 = vmatmul.mubr.msk.f32.vlgmr.msra.gmra.mxu0 %vm413_vm5, %v734_v45  ;;  %v746_v3 = vsel %vm2052_vm8, %v733_v46, 0.0 }
 0x209   :  { %1564 = vmatprep.mubr.msk.f32.mxu0 %vm413_vm5, %v746_v3  ;;  %1576 = vmatpush3.msra.mxu0 %v972_v48 }
 0x20c   :  { %1565 = vmatmul.mubr.msk.f32.gmra.mxu0 %vm413_vm5, %v732_v5  ;;  %v1450_v5 = vld [vmem:[%s2157_s11] ss:$0 sm:$0xff] }
 0x2c2   :  { %v1555_v49 = vpop.f32.mrf.mxu1 }
 0x2c4   :  { %v829_v50 = vpop.f32.mrf.mxu1 }
 0x2c6   :  { %v1558_v54 = vpop.f32.mrf.mxu1 }
 0x2c8   :  { %v1563_v51 = vpop.f32.mrf.mxu0  ;;  %v839_v61 = vpop.f32.mrf.mxu1 }
 0x2c9   :  { %v932_v52 = vadd.f32 %v1563_v51, %v1555_v49 }
 0x2ca   :  { %v926_v55 = vpop.f32.mrf.mxu0 }
 0x2cb   :  { %v927_v56 = vadd.f32 %v926_v55, %v829_v50  ;;  %v953_v57 = vadd.f32 %v1439_v53, %v932_v52  ;;  %v1451_v55 = vld [vmem:[#allocation2] ss:$0 sm:$0xff] }
 0x2cc   :  { %v1566_v58 = vpop.f32.mrf.mxu0 }
 0x2cd   :  { %v952_v59 = vadd.f32 %v1439_v53, %v927_v56  ;;  %v942_v60 = vadd.f32 %v1566_v58, %v1558_v54  ;;  %v957_v6 = vmax.f32 %v953_v57, 0.0  ;;  %v1801_v54 = vmov 0  }
 0x2ce   :  { %v936_v62 = vpop.f32.mrf.mxu0  ;;  %1604 = vset.pattern.permute.xlu0 %v1801_v54  ;;  %1605 = vset.pattern.permute.xlu1 %v1801_v54 }
 0x2cf   :  { %v956_v63 = vmax.f32 %v952_v59, 0.0  ;;  %v955_v0 = vadd.f32 %v1439_v53, %v942_v60  ;;  %v937_v1 = vadd.f32 %v936_v62, %v839_v61  ;;  %v961_v12 = vrot.slane %v957_v6, 6 }
 0x2d1   :  { %v959_v7 = vmax.f32 %v955_v0, 0.0  ;;  %v954_v8 = vadd.f32 %v1439_v53, %v937_v1  ;;  %1569 = vmatprep.mubr.msk.f32.mxu1 %vm413_vm5, %v956_v63  ;;  %v960_v9 = vrot.slane %v956_v63, 6 }
 0x2d2   :  { %1570 = vmatmul.mubr.msk.f32.vlgmr.msra.gmra.mxu1 %vm413_vm5, %v957_v6 }
 0x2d3   :  { %v963_v10 = vrot.slane %v959_v7, 6  ;;  %v958_v11 = vmax.f32 %v954_v8, 0.0  ;;  %v966_v16 = vsel %vm731_vm7, %v960_v9, %v961_v12 }
 0x2d5   :  { %v962_v13 = vrot.slane %v958_v11, 6  ;;  %1572 = vmatprep.mubr.msk.f32.mxu1 %vm413_vm5, %v958_v11  ;;  %v967_v14 = vsel %vm731_vm7, %v963_v10, %v960_v9 }
 0x2d6   :  { %1573 = vmatmul.mubr.msk.f32.gmra.mxu1 %vm413_vm5, %v959_v7  ;;  %v968_v15 = vsel %vm2039_vm6, %v967_v14, 0.0 }
 0x2d7   :  { %1577 = vmatprep.mubr.msk.f32.mxu0 %vm413_vm5, %v968_v15  ;;  %v965_v17 = vsel %vm731_vm7, %v961_v12, %v962_v13  ;;  %v964_v19 = vsel %vm731_vm7, %v962_v13, %v963_v10 }
 0x2d8   :  { %1578 = vmatmul.mubr.msk.f32.vlgmr.msra.gmra.mxu0 %vm413_vm5, %v966_v16  ;;  %v970_v18 = vsel %vm2052_vm8, %v965_v17, 0.0  ;;  %v1274_v16 = vld [vmem:[%s2159_s13] sm:$0xff] }
 0x2d9   :  { %1580 = vmatprep.mubr.msk.f32.mxu0 %vm413_vm5, %v970_v18  ;;  %1583 = vmatprep.subr.mxu1 %v1274_v16 }
 0x2da   :  { %1584 = vmatpush3.msra.mxu1 %v1274_v16 }
 0x2dc   :  { %1581 = vmatmul.mubr.msk.f32.gmra.mxu0 %vm413_vm5, %v964_v19 }
 0x392   :  { %v1571_v20 = vpop.f32.mrf.mxu1 }
 0x394   :  { %v1053_v21 = vpop.f32.mrf.mxu1 }
 0x396   :  { %v1574_v25 = vpop.f32.mrf.mxu1 }
 0x398   :  { %v1579_v22 = vpop.f32.mrf.mxu0  ;;  %v1063_v36 = vpop.f32.mrf.mxu1 }
 0x399   :  { %v1156_v24 = vadd.f32 %v1579_v22, %v1571_v20 }
 0x39a   :  { %v1150_v26 = vpop.f32.mrf.mxu0 }
 0x39b   :  { %v1177_v27 = vadd.f32 %v1449_v23, %v1156_v24  ;;  %v1151_v28 = vadd.f32 %v1150_v26, %v1053_v21 }
 0x39c   :  { %v1582_v29 = vpop.f32.mrf.mxu0 }
 0x39d   :  { %v1181_v31 = vmax.f32 %v1177_v27, 0.0  ;;  %v1176_v32 = vadd.f32 %v1449_v23, %v1151_v28  ;;  %v1166_v33 = vadd.f32 %v1582_v29, %v1574_v25  ;;  %v1456_v29 = vld [vmem:[%s2160_s14] ss:$0 sm:$0xff] }
 0x39e   :  { %v1160_v37 = vpop.f32.mrf.mxu0 }
 0x39f   :  { %v1180_v38 = vmax.f32 %v1176_v32, 0.0  ;;  %v1179_v2 = vadd.f32 %v1449_v23, %v1166_v33  ;;  %v1161_v40 = vadd.f32 %v1160_v37, %v1063_v36  ;;  %v2099_v41 = vadd.f32 %v1181_v31, %v2025_v34 }
 0x3a1   :  { %v1183_v42 = vmax.f32 %v1179_v2, 0.0  ;;  %v1178_v43 = vadd.f32 %v1449_v23, %v1161_v40  ;;  %v2102_v44 = vadd.f32 %v1180_v38, %v2023_v30  ;;  %v1189_v46 = vmax.f32 %v2099_v41, 0.0 }
 0x3a3   :  { %v1182_v4 = vmax.f32 %v1178_v43, 0.0  ;;  %v1188_v45 = vmax.f32 %v2102_v44, 0.0  ;;  %v2107_v3 = vadd.f32 %v1183_v42, %v2027_v35  ;;  %v1200_v49 = vmul.f32 %v1450_v5, %v1189_v46 }
 0x3a5   :  { %v1199_v34 = vmul.f32 %v1450_v5, %v1188_v45  ;;  %v2115_v47 = vadd.f32 %v1182_v4, %v2035_v39  ;;  %v1191_v35 = vmax.f32 %v2107_v3, 0.0  ;;  %v1206_v52 = vsel %vm413_vm5, %v1200_v49, 0.0 }
 0x3a7   :  { %v1203_v30 = vsel %vm413_vm5, %v1199_v34, 0.0  ;;  %v1190_v48 = vmax.f32 %v2115_v47, 0.0  ;;  %v1202_v53 = vmul.f32 %v1450_v5, %v1191_v35 }
 0x3a8   :  { %1204 = vadd.xlane.f32.xlu0 %v1203_v30 }
 0x3a9   :  { %v1201_v50 = vmul.f32 %v1450_v5, %v1190_v48  ;;  %v1212_v39 = vsel %vm413_vm5, %v1202_v53, 0.0 }
 0x3ab   :  { %v1209_v51 = vsel %vm413_vm5, %v1201_v50, 0.0 }
 0x3ac   :  { %1210 = vadd.xlane.f32.xlu1 %v1209_v51  ;;  %1207 = vadd.xlane.f32.xlu0 %v1206_v52 }
 0x3b0   :  { %1213 = vadd.xlane.f32.xlu1 %v1212_v39 }
 0x431   :  { %v1205_v56 = vpop.xlane.xlu0 %1204 }
 0x432   :  { %v1222_v57 = vadd.f32 %v1451_v55, %v1205_v56 }
 0x434   :  { %v1452_v58 = vmul.f32 -1.442695, %v1222_v57 }
 0x435   :  { %v1211_v59 = vpop.xlane.xlu1 %1210  ;;  %v1208_v60 = vpop.xlane.xlu0 %1207 }
 0x436   :  { %1606 = vpow2.f32 %v1452_v58  ;;  %v1224_v61 = vadd.f32 %v1451_v55, %v1211_v59  ;;  %v1223_v62 = vadd.f32 %v1451_v55, %v1208_v60 }
 0x438   :  { %v1454_v63 = vmul.f32 -1.442695, %v1224_v61  ;;  %v1453_v0 = vmul.f32 -1.442695, %v1223_v62 }
 0x439   :  { %v1214_v1 = vpop.xlane.xlu1 %1213 }
 0x43a   :  { %1608 = vpow2.f32 %v1454_v63  ;;  %v1225_v6 = vadd.f32 %v1451_v55, %v1214_v1 }
 0x43b   :  { %1610 = vpow2.f32 %v1453_v0 }
 0x43c   :  { %v1455_v7 = vmul.f32 -1.442695, %v1225_v6 }
 0x43e   :  { %1612 = vpow2.f32 %v1455_v7 }
 0x443   :  { %v1607_v8 = vpop.eup %1606 }
 0x444   :  { %v1238_v9 = vadd.f32 1.0, %v1607_v8 }
 0x446   :  { %1614 = vrcp.f32 %v1238_v9 }
 0x447   :  { %v1609_v10 = vpop.eup %1608 }
 0x448   :  { %v1611_v11 = vpop.eup %1610  ;;  %v1240_v13 = vadd.f32 1.0, %v1609_v10 }
 0x449   :  { %v1239_v12 = vadd.f32 1.0, %v1611_v11 }
 0x44b   :  { %1616 = vrcp.f32 %v1239_v12  ;;  %v1613_v14 = vpop.eup %1612 }
 0x44c   :  { %1618 = vrcp.f32 %v1240_v13  ;;  %v1241_v15 = vadd.f32 1.0, %v1613_v14 }
 0x44e   :  { %1620 = vrcp.f32 %v1241_v15 }
 0x453   :  { %v1615_v17 = vpop.eup %1614 }
 0x454   :  { %1252 = vperm.xlu0 %1604, %v1615_v17  }
 0x458   :  { %v1617_v18 = vpop.eup %1616 }
 0x459   :  { %1257 = vperm.xlu1 %1605, %v1617_v18   ;;  %v1619_v19 = vpop.eup %1618 }
 0x45b   :  { %v1621_v20 = vpop.eup %1620 }
 0x45d   :  { %1262 = vperm.xlu1 %1605, %v1619_v19  }
 0x461   :  { %1267 = vperm.xlu1 %1605, %v1621_v20  }
 0x4cf   :  { %v1253_v21 = vpop.permute.xlu0 %1252 }
 0x4d0   :  { %v1270_v22 = vmul.f32 %v1253_v21, %v1188_v45 }
 0x4d2   :  { %1585 = vmatprep.mubr.msk.f32.mxu1 %vm413_vm5, %v1270_v22 }
 0x4d4   :  { %v1258_v23 = vpop.permute.xlu1 %1257 }
 0x4d5   :  { %v1271_v24 = vmul.f32 %v1258_v23, %v1189_v46 }
 0x4d7   :  { %1586 = vmatmul.mubr.msk.f32.vlgmr.msra.gmra.mxu1 %vm413_vm5, %v1271_v24 }
 0x4d8   :  { %v1263_v25 = vpop.permute.xlu1 %1262 }
 0x4d9   :  { %v1272_v26 = vmul.f32 %v1263_v25, %v1190_v48 }
 0x4db   :  { %1588 = vmatprep.mubr.msk.f32.mxu1 %vm413_vm5, %v1272_v26 }
 0x4dc   :  { %v1268_v27 = vpop.permute.xlu1 %1267 }
 0x4dd   :  { %v1273_v28 = vmul.f32 %v1268_v27, %v1191_v35 }
 0x4df   :  { %1589 = vmatmul.mubr.msk.f32.gmra.mxu1 %vm413_vm5, %v1273_v28 }
 0x597   :  { %v1587_v31 = vpop.f32.mrf.mxu1 }
 0x598   :  { %v1366_v32 = vadd.f32 %v1587_v31, %v1456_v29 }
 0x599   :  { %v1360_v33 = vpop.f32.mrf.mxu1 }
 0x59a   :  { %1380 = vst [vmem:[#allocation15 + $0x8] sm:$0xff] %v1366_v32  ;;  %v1361_v36 = vadd.f32 %v1456_v29, %v1360_v33 }
 0x59c   :  { %1379 = vst [vmem:[#allocation15] sm:$0xff] %v1361_v36 }
 0x59f   :  { %v1590_v37 = vpop.f32.mrf.mxu1 }
 0x5a0   :  { %v1376_v38 = vadd.f32 %v1590_v37, %v1456_v29 }
 0x5a1   :  { %v1370_v2 = vpop.f32.mrf.mxu1 }
 0x5a2   :  { %1382 = vst [vmem:[#allocation15 + $0x18] sm:$0xff] %v1376_v38  ;;  %v1371_v40 = vadd.f32 %v1456_v29, %v1370_v2 }
 0x5a4   :  { %1381 = vst [vmem:[#allocation15 + $0x10] sm:$0xff] %v1371_v40 }
 0x5a5   :  { %1773 = shalt.err (!%p1770_p11)
}
 0x5a6   :  { %s1803_s14 = smov 128   ;;  %s1804_s6 = smov 8  }
 0x5a7   :  { %1394 = dma.vmem_to_hbm [thread:$0]  %s1389_s4, 512, %s2161_s15, [#allocation5], %s1803_s14, %s1803_s14, %s1804_s6  }
 0x5a8   :  { %1790 = dma.done.wait [#allocation5], 512  }
 0x5a9   :  { %1791 = vsyncadd [#allocation5], 4294966784 }
 0x5aa   :  { %1398 = vsyncpa [#allocation4], 1 }
 0x5ab   :  { %1399 = vsyncpa [#allocation7], 1 }
 0x5ac   :  { %1400 = vsyncpa [#allocation10], 1 }
 0x5ad   :  { %1401 = vsyncpa [#allocation13], 1 }
 0x5ae   :  { %1402 = vsyncpa [#allocation5], 1 }

</bundles_post_ra>
